<compile_context>
chip_gen: v7x
topology: tpu7x:2x2x1
jax: 0.10.0
libtpu: 0.0.40
codegen_flags: <defaults>
</compile_context>

<pallas_src>
import functools

import jax
import jax.numpy as jnp
from jax.experimental import pallas as pl
from jax.experimental.pallas import tpu as pltpu

LANE = 128
VMEM_LIMIT = 32 * 1024 * 1024   # safe scoped limit on every generation (incl. v7x 64MiB)
FUSED_MAX_NODES = 1024          # single-launch fully-resident path size gate (on n_pad)


def _round_up(x, m):
    return (x + m - 1) // m * m


def _nbytes(*arrays):
    return int(sum(a.size * a.dtype.itemsize for a in arrays))


# ============================================================================ fused path
def _gcn_fused_kernel(a_ref, x_ref, d_ref, w1_ref, b1_ref, w2_ref, b2_ref,
                      w3_ref, b3_ref, out_ref):
    """Both GCN layers + mean-pool + regression head in one launch (all VMEM-resident)."""
    # 0/1 adjacency: int8 storage, widened for the MXU (exact).
    a = a_ref[...].astype(jnp.float32).astype(jnp.bfloat16)
    d = d_ref[...]                                      # (n_pad, 1) f32; 0 on padded rows

    # ---- layer 1: h1 = relu(d * (A @ zd1 + zd1) + b1),   zd1 = d * (x @ w1)
    zd1 = d * jnp.dot(x_ref[...], w1_ref[...], preferred_element_type=jnp.float32)
    agg1 = jnp.dot(a, zd1.astype(jnp.bfloat16), preferred_element_type=jnp.float32) + zd1
    h1 = jnp.maximum(d * agg1 + b1_ref[...], 0.0)

    # ---- layer 2
    zd2 = d * jnp.dot(h1.astype(jnp.bfloat16), w2_ref[...],
                      preferred_element_type=jnp.float32)
    agg2 = jnp.dot(a, zd2.astype(jnp.bfloat16), preferred_element_type=jnp.float32) + zd2
    h2 = jnp.maximum(d * agg2 + b2_ref[...], 0.0)
    h2 = jnp.where(d > 0.0, h2, 0.0)                    # zero padded phantom-node rows

    # ---- mean-pool over real nodes (1/N folded into w3) + regression head
    colsum = jnp.sum(h2, axis=0, keepdims=True)         # (1, h_pad)
    out_ref[...] = (jnp.dot(colsum, w3_ref[...], preferred_element_type=jnp.float32)
                    + b3_ref[...])


def _fused_forward(a_p, x_p, d, w1_p, b1_p, w2_p, b2_p, w3_p, b3_p):
    n_pad, f_pad = x_p.shape
    h_pad = w1_p.shape[1]

    def full(shape):
        return pl.BlockSpec(shape, lambda i, _s=shape: (0,) * len(_s))

    flops = (2 * n_pad * f_pad * h_pad + 2 * n_pad * h_pad * h_pad
             + 4 * n_pad * n_pad * h_pad + 2 * h_pad)
    bytes_accessed = _nbytes(a_p, x_p, d, w1_p, b1_p, w2_p, b2_p, w3_p, b3_p) + 4

    return pl.pallas_call(
        _gcn_fused_kernel,
        out_shape=jax.ShapeDtypeStruct((1, 1), jnp.float32),
        grid_spec=pltpu.PrefetchScalarGridSpec(
            num_scalar_prefetch=0,
            grid=(1,),
            in_specs=[
                full(a_p.shape), full(x_p.shape), full(d.shape),
                full(w1_p.shape), full(b1_p.shape),
                full(w2_p.shape), full(b2_p.shape),
                full(w3_p.shape), full(b3_p.shape),
            ],
            out_specs=full((1, 1)),
        ),
        compiler_params=pltpu.CompilerParams(
            dimension_semantics=("arbitrary",),
            vmem_limit_bytes=VMEM_LIMIT,
        ),
        cost_estimate=pl.CostEstimate(
            flops=flops, transcendentals=0, bytes_accessed=bytes_accessed),
    )(a_p, x_p, d, w1_p, b1_p, w2_p, b2_p, w3_p, b3_p)


# ====================================================================== tiled (fallback)
def _transform(x, w, d, *, tile_m):
    """zd = d * (x @ w) -> bf16; feeds the aggregation MXU matmul."""
    n_pad, f_pad = x.shape
    h_pad = w.shape[1]

    def kernel(x_ref, w_ref, d_ref, zd_ref):
        xw = jnp.dot(x_ref[...], w_ref[...], preferred_element_type=jnp.float32)
        zd_ref[...] = (xw * d_ref[...]).astype(zd_ref.dtype)

    return pl.pallas_call(
        kernel,
        out_shape=jax.ShapeDtypeStruct((n_pad, h_pad), jnp.bfloat16),
        grid_spec=pltpu.PrefetchScalarGridSpec(
            num_scalar_prefetch=0,
            grid=(n_pad // tile_m,),
            in_specs=[
                pl.BlockSpec((tile_m, f_pad), lambda i: (i, 0)),
                pl.BlockSpec((f_pad, h_pad), lambda i: (0, 0)),
                pl.BlockSpec((tile_m, 1), lambda i: (i, 0)),
            ],
            out_specs=pl.BlockSpec((tile_m, h_pad), lambda i: (i, 0)),
        ),
        compiler_params=pltpu.CompilerParams(
            dimension_semantics=("parallel",),
            vmem_limit_bytes=VMEM_LIMIT,
        ),
    )(x, w, d)


def _aggregate(a_int8, zd, d, b, *, tile_m, tile_k):
    """h = relu(d * (A @ zd + zd) + b); A streamed as int8 tiles, zd/d/b VMEM-resident."""
    n_pad = a_int8.shape[0]
    h_pad = zd.shape[1]

    def kernel(a_ref, zd_ref, d_ref, b_ref, h_ref, acc_ref):
        i = pl.program_id(0)
        k = pl.program_id(1)

        @pl.when(k == 0)
        def _():
            acc_ref[...] = jnp.zeros_like(acc_ref)

        # int8 0/1 -> bf16 is exact; the VPU cast hides under the MXU/DMA bottleneck.
        a_tile = a_ref[...].astype(jnp.float32).astype(jnp.bfloat16)
        col = pl.multiple_of(k * tile_k, tile_k)
        acc_ref[...] += jnp.dot(a_tile, zd_ref[pl.ds(col, tile_k), :],
                                preferred_element_type=jnp.float32)

        @pl.when(k == pl.num_programs(1) - 1)
        def _():
            row = pl.multiple_of(i * tile_m, tile_m)
            d_row = d_ref[pl.ds(row, tile_m), :]
            zd_row = zd_ref[pl.ds(row, tile_m), :].astype(jnp.float32)
            h = d_row * (acc_ref[...] + zd_row) + b_ref[...]
            h = jnp.maximum(h, 0.0)
            h = jnp.where(d_row > 0.0, h, 0.0)          # zero padded phantom-node rows
            h_ref[...] = h.astype(h_ref.dtype)

    flops = 2 * n_pad * n_pad * h_pad
    bytes_accessed = _nbytes(a_int8, zd, d, b) + n_pad * h_pad * 2

    return pl.pallas_call(
        kernel,
        out_shape=jax.ShapeDtypeStruct((n_pad, h_pad), jnp.bfloat16),
        grid_spec=pltpu.PrefetchScalarGridSpec(
            num_scalar_prefetch=0,
            grid=(n_pad // tile_m, n_pad // tile_k),
            in_specs=[
                pl.BlockSpec((tile_m, tile_k), lambda i, k: (i, k)),   # A tile (streamed)
                pl.BlockSpec((n_pad, h_pad), lambda i, k: (0, 0)),     # zd (resident)
                pl.BlockSpec((n_pad, 1), lambda i, k: (0, 0)),         # d (resident)
                pl.BlockSpec((1, h_pad), lambda i, k: (0, 0)),         # bias (resident)
            ],
            out_specs=pl.BlockSpec((tile_m, h_pad), lambda i, k: (i, 0)),
            scratch_shapes=[pltpu.VMEM((tile_m, h_pad), jnp.float32)],
        ),
        compiler_params=pltpu.CompilerParams(
            dimension_semantics=("parallel", "arbitrary"),
            vmem_limit_bytes=VMEM_LIMIT,
        ),
        cost_estimate=pl.CostEstimate(
            flops=flops, transcendentals=0, bytes_accessed=bytes_accessed),
    )(a_int8, zd, d, b)


def _pool_head(h2, w3_over_n, b3, *, tile_m):
    """Mean-pool over nodes fused with the regression head (w3 pre-scaled by 1/N)."""
    n_pad, h_pad = h2.shape

    def kernel(h_ref, w3_ref, b3_ref, out_ref, colsum_ref):
        i = pl.program_id(0)

        @pl.when(i == 0)
        def _():
            colsum_ref[...] = jnp.zeros_like(colsum_ref)

        colsum_ref[...] += jnp.sum(h_ref[...].astype(jnp.float32), axis=0, keepdims=True)

        @pl.when(i == pl.num_programs(0) - 1)
        def _():
            out_ref[...] = (jnp.dot(colsum_ref[...], w3_ref[...],
                                    preferred_element_type=jnp.float32) + b3_ref[...])

    return pl.pallas_call(
        kernel,
        out_shape=jax.ShapeDtypeStruct((1, 1), jnp.float32),
        grid_spec=pltpu.PrefetchScalarGridSpec(
            num_scalar_prefetch=0,
            grid=(n_pad // tile_m,),
            in_specs=[
                pl.BlockSpec((tile_m, h_pad), lambda i: (i, 0)),
                pl.BlockSpec((h_pad, 1), lambda i: (0, 0)),
                pl.BlockSpec((1, 1), lambda i: (0, 0)),
            ],
            out_specs=pl.BlockSpec((1, 1), lambda i: (0, 0)),
            scratch_shapes=[pltpu.VMEM((1, h_pad), jnp.float32)],
        ),
        compiler_params=pltpu.CompilerParams(
            dimension_semantics=("arbitrary",),    # sequential accumulation across tiles
            vmem_limit_bytes=VMEM_LIMIT,
        ),
    )(h2, w3_over_n, b3)


# =============================================================================== forward
def gcn_reg_forward(adj, x, params, *, tile_m=256, tile_k=256, force_tiled=False):
    """h1 = relu(A_hat @ X @ W1 + b1); h2 = relu(A_hat @ h1 @ W2 + b2);
       y = mean_nodes(h2) @ W3 + b3,  with A_hat = D^-1/2 (A + I) D^-1/2."""
    w1, b1, w2, b2, w3, b3 = params
    n = adj.shape[0]
    f_in = x.shape[1]
    hidden = w1.shape[1]

    n_pad = _round_up(n, max(256, tile_m, tile_k))
    f_pad = _round_up(f_in, LANE)
    h_pad = _round_up(hidden, LANE)
    use_fused = (not force_tiled) and n_pad <= FUSED_MAX_NODES

    # d = rsqrt(deg + 1) folds the symmetric normalization (self-loops included).
    # Padded phantom nodes get d = 0 -> their rows are zeroed before pooling.
    deg_hat = jnp.sum(adj, axis=1) + 1.0
    d = jnp.pad(jax.lax.rsqrt(deg_hat), (0, n_pad - n)).reshape(n_pad, 1).astype(jnp.float32)

    # Adjacency kept as int8 in HBM (0/1 exact); cast to bf16 in-kernel before the MXU dot.
    a_p = jnp.pad(adj, ((0, n_pad - n), (0, n_pad - n))).astype(jnp.int8)
    x_p = jnp.pad(x, ((0, n_pad - n), (0, f_pad - f_in))).astype(jnp.bfloat16)
    w1_p = jnp.pad(w1, ((0, f_pad - f_in), (0, h_pad - hidden))).astype(jnp.bfloat16)
    b1_p = jnp.pad(b1, ((0, 0), (0, h_pad - hidden))).astype(jnp.float32)
    w2_p = jnp.pad(w2, ((0, h_pad - hidden), (0, h_pad - hidden))).astype(jnp.bfloat16)
    b2_p = jnp.pad(b2, ((0, 0), (0, h_pad - hidden))).astype(jnp.float32)
    w3_p = (jnp.pad(w3, ((0, h_pad - hidden), (0, 0))) / float(n)).astype(jnp.float32)
    b3_p = b3.astype(jnp.float32)

    if use_fused:
        # Single launch, everything VMEM-resident (A int8 at n_pad<=1024 is <=1 MiB).
        return _fused_forward(a_p, x_p, d, w1_p, b1_p, w2_p, b2_p, w3_p, b3_p)

    # Large-graph fallback: stream the N^2 int8 adjacency in 256x256 tiles; zd / d / bias
    # are VMEM-resident inside the aggregate kernel (single copy, no double stream).
    zd1 = _transform(x_p, w1_p, d, tile_m=tile_m)
    h1 = _aggregate(a_p, zd1, d, b1_p, tile_m=tile_m, tile_k=tile_k)
    zd2 = _transform(h1, w2_p, d, tile_m=tile_m)
    h2 = _aggregate(a_p, zd2, d, b2_p, tile_m=tile_m, tile_k=tile_k)
    return _pool_head(h2, w3_p, b3_p, tile_m=tile_m)


def init_params(key, f_in, hidden):
    k1, k2, k3, k4, k5 = jax.random.split(key, 5)
    w1 = jax.random.normal(k1, (f_in, hidden), jnp.float32) * (1.0 / jnp.sqrt(f_in))
    b1 = jax.random.normal(k4, (1, hidden), jnp.float32) * 0.1
    w2 = jax.random.normal(k2, (hidden, hidden), jnp.float32) * (1.0 / jnp.sqrt(hidden))
    b2 = jax.random.normal(k5, (1, hidden), jnp.float32) * 0.1
    w3 = jax.random.normal(k3, (hidden, 1), jnp.float32) * (1.0 / jnp.sqrt(hidden))
    b3 = jnp.zeros((1, 1), jnp.float32)
    return (w1, b1, w2, b2, w3, b3)


def _make_graph(key, n, f_in, p_edge=0.05):
    k_x, k_a = jax.random.split(key)
    x = jax.random.normal(k_x, (n, f_in), jnp.float32)
    a_rand = jax.random.uniform(k_a, (n, n))
    adj = (a_rand < p_edge).astype(jnp.float32)
    adj = jnp.maximum(adj, adj.T) * (1.0 - jnp.eye(n, dtype=jnp.float32))
    return adj, x


def _reference(adj, x, params):
    w1, b1, w2, b2, w3, b3 = params
    a_hat = adj + jnp.eye(adj.shape[0], dtype=adj.dtype)
    d_is = jax.lax.rsqrt(jnp.sum(a_hat, axis=1))
    a_n = a_hat * d_is[:, None] * d_is[None, :]
    h1 = jnp.maximum(a_n @ (x @ w1) + b1, 0.0)
    h2 = jnp.maximum(a_n @ (h1 @ w2) + b2, 0.0)
    return jnp.mean(h2, axis=0, keepdims=True) @ w3 + b3


if __name__ == "__main__":
    key = jax.random.PRNGKey(0)
    k_g1, k_g2, k_p = jax.random.split(key, 3)

    F_IN = 48     # input features (pads to 128 lanes)
    HIDDEN = 64   # hidden width  (pads to 128 lanes)
    params = init_params(k_p, F_IN, HIDDEN)

    # --- 1) demo-scale graph -> fused single-launch path ---------------------------------
    N1 = 200
    adj1, x1 = _make_graph(k_g1, N1, F_IN)
    y1 = jax.jit(gcn_reg_forward)(adj1, x1, params)
    jax.block_until_ready(y1)
    y1_ref = _reference(adj1, x1, params)
    err1 = jnp.max(jnp.abs(y1 - y1_ref))
    assert err1 < 5e-2 + 5e-2 * jnp.max(jnp.abs(y1_ref)), (y1, y1_ref, err1)

    # --- 2) force the large-graph tiled/streaming path for coverage ----------------------
    N2 = 300      # pads to 512 -> (2, 2) aggregation grid with 256-tiles
    adj2, x2 = _make_graph(k_g2, N2, F_IN)
    tiled_fwd = jax.jit(functools.partial(gcn_reg_forward, force_tiled=True))
    y2 = tiled_fwd(adj2, x2, params)
    jax.block_until_ready(y2)
    y2_ref = _reference(adj2, x2, params)
    err2 = jnp.max(jnp.abs(y2 - y2_ref))
    assert err2 < 5e-2 + 5e-2 * jnp.max(jnp.abs(y2_ref)), (y2, y2_ref, err2)

    print("KERNEL_OK")
</pallas_src>

<mosaic_0001>
module attributes {stable_mosaic.version = 11 : i64} {
  func.func @_gcn_fused_kernel(%arg0: i32, %arg1: memref<256x256xi8, #tpu.memory_space<vmem>>, %arg2: memref<256x128xbf16, #tpu.memory_space<vmem>>, %arg3: memref<256x1xf32, #tpu.memory_space<vmem>>, %arg4: memref<128x128xbf16, #tpu.memory_space<vmem>>, %arg5: memref<1x128xf32, #tpu.memory_space<vmem>>, %arg6: memref<128x128xbf16, #tpu.memory_space<vmem>>, %arg7: memref<1x128xf32, #tpu.memory_space<vmem>>, %arg8: memref<128x1xf32, #tpu.memory_space<vmem>>, %arg9: memref<1x1xf32, #tpu.memory_space<vmem>>, %arg10: memref<1x1xf32, #tpu.memory_space<vmem>>) attributes {dimension_semantics = [#tpu.dimension_semantics<arbitrary>], iteration_bounds = array<i64: 1>, scalar_prefetch = 0 : i64, scratch_operands = 0 : i64, tpu.core_type = #tpu.core_type<tc>, window_params = [{pipeline_mode = #tpu.pipeline_mode<synchronous>, transform_indices = @transform_0, window_bounds = array<i64: 256, 256>}, {pipeline_mode = #tpu.pipeline_mode<synchronous>, transform_indices = @transform_1, window_bounds = array<i64: 256, 128>}, {pipeline_mode = #tpu.pipeline_mode<synchronous>, transform_indices = @transform_2, window_bounds = array<i64: 256, 1>}, {pipeline_mode = #tpu.pipeline_mode<synchronous>, transform_indices = @transform_3, window_bounds = array<i64: 128, 128>}, {pipeline_mode = #tpu.pipeline_mode<synchronous>, transform_indices = @transform_4, window_bounds = array<i64: 1, 128>}, {pipeline_mode = #tpu.pipeline_mode<synchronous>, transform_indices = @transform_5, window_bounds = array<i64: 128, 128>}, {pipeline_mode = #tpu.pipeline_mode<synchronous>, transform_indices = @transform_6, window_bounds = array<i64: 1, 128>}, {pipeline_mode = #tpu.pipeline_mode<synchronous>, transform_indices = @transform_7, window_bounds = array<i64: 128, 1>}, {pipeline_mode = #tpu.pipeline_mode<synchronous>, transform_indices = @transform_8, window_bounds = array<i64: 1, 1>}, {pipeline_mode = #tpu.pipeline_mode<synchronous>, transform_indices = @transform_9, window_bounds = array<i64: 1, 1>}]} {
    %c0 = arith.constant 0 : index
    %c0_0 = arith.constant 0 : index
    %0 = vector.load %arg1[%c0, %c0_0] : memref<256x256xi8, #tpu.memory_space<vmem>>, vector<256x256xi8>
    %1 = arith.sitofp %0 : vector<256x256xi8> to vector<256x256xf32>
    %2 = arith.truncf %1 : vector<256x256xf32> to vector<256x256xbf16>
    %c0_1 = arith.constant 0 : index
    %c0_2 = arith.constant 0 : index
    %3 = vector.load %arg3[%c0_1, %c0_2] : memref<256x1xf32, #tpu.memory_space<vmem>>, vector<256x1xf32>
    %c0_3 = arith.constant 0 : index
    %c0_4 = arith.constant 0 : index
    %4 = vector.load %arg2[%c0_3, %c0_4] : memref<256x128xbf16, #tpu.memory_space<vmem>>, vector<256x128xbf16>
    %c0_5 = arith.constant 0 : index
    %c0_6 = arith.constant 0 : index
    %5 = vector.load %arg4[%c0_5, %c0_6] : memref<128x128xbf16, #tpu.memory_space<vmem>>, vector<128x128xbf16>
    %cst = arith.constant dense<0.000000e+00> : vector<256x128xf32>
    %6 = tpu.matmul %4, %5, %cst {dimension_numbers = #tpu.dot_dimension_numbers<[1], [0], [0], [1], [0, 0, 1, 1], [], []>} : vector<256x128xbf16>, vector<128x128xbf16>, vector<256x128xf32> -> vector<256x128xf32>
    %7 = vector.broadcast %3 : vector<256x1xf32> to vector<256x128xf32>
    %8 = arith.mulf %7, %6 : vector<256x128xf32>
    %9 = arith.truncf %8 : vector<256x128xf32> to vector<256x128xbf16>
    %cst_7 = arith.constant dense<0.000000e+00> : vector<256x128xf32>
    %10 = tpu.matmul %2, %9, %cst_7 {dimension_numbers = #tpu.dot_dimension_numbers<[1], [0], [0], [1], [0, 0, 1, 1], [], []>} : vector<256x256xbf16>, vector<256x128xbf16>, vector<256x128xf32> -> vector<256x128xf32>
    %11 = arith.addf %10, %8 : vector<256x128xf32>
    %12 = vector.broadcast %3 : vector<256x1xf32> to vector<256x128xf32>
    %13 = arith.mulf %12, %11 : vector<256x128xf32>
    %c0_8 = arith.constant 0 : index
    %c0_9 = arith.constant 0 : index
    %14 = vector.load %arg5[%c0_8, %c0_9] : memref<1x128xf32, #tpu.memory_space<vmem>>, vector<1x128xf32>
    %15 = vector.broadcast %14 : vector<1x128xf32> to vector<256x128xf32>
    %16 = arith.addf %13, %15 : vector<256x128xf32>
    %cst_10 = arith.constant 0.000000e+00 : f32
    %17 = vector.broadcast %cst_10 : f32 to vector<256x128xf32>
    %18 = arith.maximumf %16, %17 : vector<256x128xf32>
    %19 = arith.truncf %18 : vector<256x128xf32> to vector<256x128xbf16>
    %c0_11 = arith.constant 0 : index
    %c0_12 = arith.constant 0 : index
    %20 = vector.load %arg6[%c0_11, %c0_12] : memref<128x128xbf16, #tpu.memory_space<vmem>>, vector<128x128xbf16>
    %cst_13 = arith.constant dense<0.000000e+00> : vector<256x128xf32>
    %21 = tpu.matmul %19, %20, %cst_13 {dimension_numbers = #tpu.dot_dimension_numbers<[1], [0], [0], [1], [0, 0, 1, 1], [], []>} : vector<256x128xbf16>, vector<128x128xbf16>, vector<256x128xf32> -> vector<256x128xf32>
    %22 = vector.broadcast %3 : vector<256x1xf32> to vector<256x128xf32>
    %23 = arith.mulf %22, %21 : vector<256x128xf32>
    %24 = arith.truncf %23 : vector<256x128xf32> to vector<256x128xbf16>
    %cst_14 = arith.constant dense<0.000000e+00> : vector<256x128xf32>
    %25 = tpu.matmul %2, %24, %cst_14 {dimension_numbers = #tpu.dot_dimension_numbers<[1], [0], [0], [1], [0, 0, 1, 1], [], []>} : vector<256x256xbf16>, vector<256x128xbf16>, vector<256x128xf32> -> vector<256x128xf32>
    %26 = arith.addf %25, %23 : vector<256x128xf32>
    %27 = vector.broadcast %3 : vector<256x1xf32> to vector<256x128xf32>
    %28 = arith.mulf %27, %26 : vector<256x128xf32>
    %c0_15 = arith.constant 0 : index
    %c0_16 = arith.constant 0 : index
    %29 = vector.load %arg7[%c0_15, %c0_16] : memref<1x128xf32, #tpu.memory_space<vmem>>, vector<1x128xf32>
    %30 = vector.broadcast %29 : vector<1x128xf32> to vector<256x128xf32>
    %31 = arith.addf %28, %30 : vector<256x128xf32>
    %cst_17 = arith.constant 0.000000e+00 : f32
    %32 = vector.broadcast %cst_17 : f32 to vector<256x128xf32>
    %33 = arith.maximumf %31, %32 : vector<256x128xf32>
    %cst_18 = arith.constant 0.000000e+00 : f32
    %34 = vector.broadcast %cst_18 : f32 to vector<256x1xf32>
    %35 = arith.cmpf ogt, %3, %34 : vector<256x1xf32>
    %cst_19 = arith.constant 0.000000e+00 : f32
    %36 = vector.shape_cast %35 : vector<256x1xi1> to vector<256x1xi1>
    %37 = vector.broadcast %36 : vector<256x1xi1> to vector<256x128xi1>
    %38 = vector.broadcast %cst_19 : f32 to vector<256x128xf32>
    %39 = arith.select %37, %33, %38 : vector<256x128xi1>, vector<256x128xf32>
    %cst_20 = arith.constant dense<0.000000e+00> : vector<128xf32>
    %40 = vector.multi_reduction <add>, %39, %cst_20 [0] : vector<256x128xf32> to vector<128xf32>
    %41 = vector.shape_cast %40 : vector<128xf32> to vector<1x128xf32>
    %c0_21 = arith.constant 0 : index
    %c0_22 = arith.constant 0 : index
    %42 = vector.load %arg8[%c0_21, %c0_22] : memref<128x1xf32, #tpu.memory_space<vmem>>, vector<128x1xf32>
    %cst_23 = arith.constant dense<0.000000e+00> : vector<1x1xf32>
    %43 = tpu.matmul %41, %42, %cst_23 {dimension_numbers = #tpu.dot_dimension_numbers<[1], [0], [0], [1], [0, 0, 1, 1], [], []>} : vector<1x128xf32>, vector<128x1xf32>, vector<1x1xf32> -> vector<1x1xf32>
    %c0_24 = arith.constant 0 : index
    %c0_25 = arith.constant 0 : index
    %44 = vector.load %arg9[%c0_24, %c0_25] : memref<1x1xf32, #tpu.memory_space<vmem>>, vector<1x1xf32>
    %45 = arith.addf %43, %44 : vector<1x1xf32>
    %c0_26 = arith.constant 0 : index
    %c0_27 = arith.constant 0 : index
    %46 = vector.load %arg10[%c0_26, %c0_27] : memref<1x1xf32, #tpu.memory_space<vmem>>, vector<1x1xf32>
    tpu.vector_store %arg10[%c0_26, %c0_27], %45 {strides = array<i32>} : memref<1x1xf32, #tpu.memory_space<vmem>>, vector<1x1xf32>,
    return
  }
  func.func @transform_0(%arg0: i32) -> (i32, i32) {
    %c0_i32 = arith.constant 0 : i32
    %c0_i32_0 = arith.constant 0 : i32
    %c0_i32_1 = arith.constant 0 : i32
    return %c0_i32, %c0_i32_0 : i32, i32
  }
  func.func @transform_1(%arg0: i32) -> (i32, i32) {
    %c0_i32 = arith.constant 0 : i32
    %c0_i32_0 = arith.constant 0 : i32
    %c0_i32_1 = arith.constant 0 : i32
    return %c0_i32, %c0_i32_0 : i32, i32
  }
  func.func @transform_2(%arg0: i32) -> (i32, i32) {
    %c0_i32 = arith.constant 0 : i32
    %c0_i32_0 = arith.constant 0 : i32
    %c0_i32_1 = arith.constant 0 : i32
    return %c0_i32, %c0_i32_0 : i32, i32
  }
  func.func @transform_3(%arg0: i32) -> (i32, i32) {
    %c0_i32 = arith.constant 0 : i32
    %c0_i32_0 = arith.constant 0 : i32
    %c0_i32_1 = arith.constant 0 : i32
    return %c0_i32, %c0_i32_0 : i32, i32
  }
  func.func @transform_4(%arg0: i32) -> (i32, i32) {
    %c0_i32 = arith.constant 0 : i32
    %c0_i32_0 = arith.constant 0 : i32
    %c0_i32_1 = arith.constant 0 : i32
    return %c0_i32, %c0_i32_0 : i32, i32
  }
  func.func @transform_5(%arg0: i32) -> (i32, i32) {
    %c0_i32 = arith.constant 0 : i32
    %c0_i32_0 = arith.constant 0 : i32
    %c0_i32_1 = arith.constant 0 : i32
    return %c0_i32, %c0_i32_0 : i32, i32
  }
  func.func @transform_6(%arg0: i32) -> (i32, i32) {
    %c0_i32 = arith.constant 0 : i32
    %c0_i32_0 = arith.constant 0 : i32
    %c0_i32_1 = arith.constant 0 : i32
    return %c0_i32, %c0_i32_0 : i32, i32
  }
  func.func @transform_7(%arg0: i32) -> (i32, i32) {
    %c0_i32 = arith.constant 0 : i32
    %c0_i32_0 = arith.constant 0 : i32
    %c0_i32_1 = arith.constant 0 : i32
    return %c0_i32, %c0_i32_0 : i32, i32
  }
  func.func @transform_8(%arg0: i32) -> (i32, i32) {
    %c0_i32 = arith.constant 0 : i32
    %c0_i32_0 = arith.constant 0 : i32
    %c0_i32_1 = arith.constant 0 : i32
    return %c0_i32, %c0_i32_0 : i32, i32
  }
  func.func @transform_9(%arg0: i32) -> (i32, i32) {
    %c0_i32 = arith.constant 0 : i32
    %c0_i32_0 = arith.constant 0 : i32
    %c0_i32_1 = arith.constant 0 : i32
    return %c0_i32, %c0_i32_0 : i32, i32
  }
}

</mosaic_0001>

<bundles_post_ra>
// kernel: gcn_reg_forward.1
= control target key start
LH: loop header
LB: loop body
LE: loop exit
PB: predicated region body
PF: predicated region fallthrough
CT: control target
= control target key end

     0   :  { %s3653_s0 = inlined_call_operand.vmem [shape: s8[256,256], index: 0, kind: input, shape index: {}]   ;;  %s3654_s1 = inlined_call_operand.vmem [shape: bf16[256,128], index: 1, kind: input, shape index: {}]   ;;  %s3655_s2 = inlined_call_operand.vmem [shape: f32[256,1], index: 2, kind: input, shape index: {}]   ;;  %s3656_s3 = inlined_call_operand.vmem [shape: bf16[128,128], index: 3, kind: input, shape index: {}]   ;;  %s3657_s4 = inlined_call_operand.vmem [shape: f32[1,128], index: 4, kind: input, shape index: {}]   ;;  %s3658_s5 = inlined_call_operand.vmem [shape: bf16[128,128], index: 5, kind: input, shape index: {}]   ;;  %s3659_s6 = inlined_call_operand.vmem [shape: f32[1,128], index: 6, kind: input, shape index: {}]   ;;  %s3660_s7 = inlined_call_operand.vmem [shape: f32[128,1], index: 7, kind: input, shape index: {}]   ;;  %s3661_s8 = inlined_call_operand.<no memory space> [shape: f32[1,1], index: 8, kind: input, shape index: {}]   ;;  %s3662_s9 = inlined_call_operand.hbm [shape: f32[1,1], index: 9, kind: output, shape index: {}]  }
   0x1   :  { %v14_v0 = vstv %s3661_s8 }
   0x2   :  { %15 = vst [vmem:[#allocation2] sm:$0x1] %v14_v0 }
   0x3   :  { %v2343_v1 = vld [vmem:[%s3656_s3] sm:$0xff]   ;;  %v2344_v2 = vld [vmem:[%s3656_s3 + $0x8] sm:$0xff]   ;;  %v2399_v3 = vmov 0   ;;  %v2345_v4 = vld [vmem:[%s3656_s3 + $0x10] sm:$0xff]  }
   0x4   :  { %2342 = vset.pattern.permute.xlu1 %v2399_v3  ;;  %2341 = vset.pattern.permute.xlu0 %v2399_v3  ;;  %v100_v5 = vld [vmem:[%s3655_s2 + $0x80] sm:$0xff]  ;;  %v2346_v7 = vld [vmem:[%s3656_s3 + $0x18] sm:$0xff]   ;;  %v101_v8 = vld [vmem:[%s3655_s2 + $0x88] sm:$0xff] }
   0x5   :  { %2181 = vmatprep.subr.bf16.mxu1 %v2343_v1  ;;  %v2474_v6 = vld [vmem:[%s3655_s2] sm:$0xff]  ;;  %551 = vperm.xlu0 %2341, %v100_v5   ;;  %vm1510_vm0 = vcmp.gt.f32.partialorder %v100_v5, 0.0  ;;  %v2486_v9 = vld [vmem:[%s3655_s2 + $0x8] sm:$0xff]  ;;  %v102_v10 = vld [vmem:[%s3655_s2 + $0x90] sm:$0xff]  ;;  %vm1511_vm1 = vcmp.gt.f32.partialorder %v101_v8, 0.0 }
   0x6   :  { %2182 = vmatpush3.bf16.msra.mxu1 %v2343_v1  ;;  %471 = vperm.xlu1 %2342, %v2474_v6   ;;  %v2492_v11 = vsel %vm1510_vm0, 1, %v2399_v3  ;;  %v2351_v12 = vld [vmem:[%s3654_s1] sm:$0xff]   ;;  %v103_v13 = vld [vmem:[%s3655_s2 + $0x98] sm:$0xff]  ;;  %v2501_v14 = vsel %vm1511_vm1, 1, %v2399_v3  ;;  %vm1512_vm3 = vcmp.gt.f32.partialorder %v102_v10, 0.0  ;;  %v2348_v16 = vld [vmem:[%s3656_s3 + $0x28] sm:$0xff]  }
   0x7   :  { %2183 = vmatprep.subr.bf16.mxu1 %v2344_v2  ;;  %v2347_v15 = vld [vmem:[%s3656_s3 + $0x20] sm:$0xff]   ;;  %vm1513_vm2 = vcmp.gt.f32.partialorder %v103_v13, 0.0  ;;  %2197 = vmatprep.mubr.bf16.mxu1 %v2351_v12  ;;  %v2514_v18 = vsel %vm1512_vm3, 1, %v2399_v3  ;;  %v2519_v19 = vld [vmem:[%s3655_s2 + $0x10] sm:$0xff]  ;;  %v2524_v20 = vld [vmem:[%s3655_s2 + $0x18] sm:$0xff] }
   0x8   :  { %v2511_v17 = vsel %vm1513_vm2, 1, %v2399_v3  ;;  %v105_v21 = vld [vmem:[%s3655_s2 + $0xa8] sm:$0xff]  ;;  %v2349_v22 = vld [vmem:[%s3656_s3 + $0x30] sm:$0xff]   ;;  %v104_v24 = vld [vmem:[%s3655_s2 + $0xa0] sm:$0xff] }
   0x9   :  { %556 = vperm.xlu0 %2341, %v101_v8   ;;  %vm1515_vm4 = vcmp.gt.f32.partialorder %v105_v21, 0.0  ;;  %v107_v25 = vld [vmem:[%s3655_s2 + $0xb8] sm:$0xff]  ;;  %vm1514_vm5 = vcmp.gt.f32.partialorder %v104_v24, 0.0  ;;  %v2549_v27 = vld [vmem:[%s3655_s2 + $0x20] sm:$0xff]  ;;  %v2554_v28 = vld [vmem:[%s3655_s2 + $0x28] sm:$0xff] }
   0xa   :  { %2184 = vmatpush3.bf16.msra.mxu1 %v2344_v2  ;;  %476 = vperm.xlu1 %2342, %v2486_v9   ;;  %v2534_v23 = vsel %vm1515_vm4, 1, %v2399_v3  ;;  %vm1517_vm6 = vcmp.gt.f32.partialorder %v107_v25, 0.0  ;;  %v2350_v26 = vld [vmem:[%s3656_s3 + $0x38] sm:$0xff]   ;;  %v2557_v29 = vsel %vm1514_vm5, 1, %v2399_v3  ;;  %v106_v31 = vld [vmem:[%s3655_s2 + $0xb0] sm:$0xff]  ;;  %v2352_v32 = vld [vmem:[%s3654_s1 + $0x8] sm:$0xff]  }
   0xb   :  { %2185 = vmatprep.subr.bf16.mxu1 %v2345_v4  ;;  %v2560_v30 = vsel %vm1517_vm6, 1, %v2399_v3  ;;  %vm1516_vm7 = vcmp.gt.f32.partialorder %v106_v31, 0.0  ;;  %v2353_v33 = vld [vmem:[%s3654_s1 + $0x10] sm:$0xff]   ;;  %v2584_v36 = vld [vmem:[%s3655_s2 + $0x38] sm:$0xff]  ;;  %v109_v37 = vld [vmem:[%s3655_s2 + $0xc8] sm:$0xff] }
   0xc   :  { %v2574_v34 = vsel %vm1516_vm7, 1, %v2399_v3  ;;  %v2579_v35 = vld [vmem:[%s3655_s2 + $0x30] sm:$0xff]  ;;  %v108_v38 = vld [vmem:[%s3655_s2 + $0xc0] sm:$0xff]  ;;  %vm1519_vm8 = vcmp.gt.f32.partialorder %v109_v37, 0.0  ;;  %v111_v40 = vld [vmem:[%s3655_s2 + $0xd8] sm:$0xff] }
   0xd   :  { %561 = vperm.xlu0 %2341, %v102_v10   ;;  %v110_v39 = vld [vmem:[%s3655_s2 + $0xd0] sm:$0xff]  ;;  %v112_v41 = vld [vmem:[%s3655_s2 + $0xe0] sm:$0xff]  ;;  %v113_v42 = vld [vmem:[%s3655_s2 + $0xe8] sm:$0xff]  ;;  %v2608_v44 = vsel %vm1519_vm8, 1, %v2399_v3  ;;  %vm1518_vm9 = vcmp.gt.f32.partialorder %v108_v38, 0.0  ;;  %vm1521_vm10 = vcmp.gt.f32.partialorder %v111_v40, 0.0 }
   0xe   :  { %2186 = vmatpush3.bf16.msra.mxu1 %v2345_v4  ;;  %566 = vperm.xlu1 %2342, %v103_v13   ;;  %v114_v43 = vld [vmem:[%s3655_s2 + $0xf0] sm:$0xff]  ;;  %v115_v45 = vld [vmem:[%s3655_s2 + $0xf8] sm:$0xff]  ;;  %vm1520_vm11 = vcmp.gt.f32.partialorder %v110_v39, 0.0  ;;  %v2619_v47 = vsel %vm1518_vm9, 1, %v2399_v3  ;;  %v2622_v48 = vsel %vm1521_vm10, 1, %v2399_v3  ;;  %vm1523_vm12 = vcmp.gt.f32.partialorder %v113_v42, 0.0 }
   0xf   :  { %2187 = vmatprep.subr.bf16.mxu1 %v2346_v7  ;;  %v2354_v46 = vld [vmem:[%s3654_s1 + $0x18] sm:$0xff]   ;;  %v2625_v49 = vsel %vm1520_vm11, 1, %v2399_v3  ;;  %v2355_v50 = vld [vmem:[%s3654_s1 + $0x20] sm:$0xff]   ;;  %v2631_v51 = vsel %vm1523_vm12, 1, %v2399_v3  ;;  %vm1522_vm13 = vcmp.gt.f32.partialorder %v112_v41, 0.0  ;;  %vm1525_vm14 = vcmp.gt.f32.partialorder %v115_v45, 0.0 }
  0x10   :  { %vm1524_vm15 = vcmp.gt.f32.partialorder %v114_v43, 0.0  ;;  %v2636_v52 = vld [vmem:[%s3655_s2 + $0x40] sm:$0xff]  ;;  %v2639_v53 = vsel %vm1522_vm13, 1, %v2399_v3  ;;  %v2642_v54 = vsel %vm1525_vm14, 1, %v2399_v3  ;;  %v2650_v56 = vld [vmem:[%s3655_s2 + $0x48] sm:$0xff] }
  0x11   :  { %481 = vperm.xlu0 %2341, %v2519_v19   ;;  %v2645_v55 = vsel %vm1524_vm15, 1, %v2399_v3 }
  0x12   :  { %2188 = vmatpush3.bf16.msra.mxu1 %v2346_v7  ;;  %486 = vperm.xlu1 %2342, %v2524_v20  }
  0x13   :  { %2189 = vmatprep.subr.bf16.mxu1 %v2347_v15 }
  0x15   :  { %571 = vperm.xlu0 %2341, %v104_v24  }
  0x16   :  { %2190 = vmatpush3.bf16.msra.mxu1 %v2347_v15  ;;  %576 = vperm.xlu1 %2342, %v105_v21  }
  0x17   :  { %2191 = vmatprep.subr.bf16.mxu1 %v2348_v16 }
  0x19   :  { %491 = vperm.xlu0 %2341, %v2549_v27  }
  0x1a   :  { %2192 = vmatpush3.bf16.msra.mxu1 %v2348_v16  ;;  %496 = vperm.xlu1 %2342, %v2554_v28  }
  0x1b   :  { %2193 = vmatprep.subr.bf16.mxu1 %v2349_v22 }
  0x1d   :  { %581 = vperm.xlu0 %2341, %v106_v31  }
  0x1e   :  { %2194 = vmatpush3.bf16.msra.mxu1 %v2349_v22  ;;  %586 = vperm.xlu1 %2342, %v107_v25  }
  0x1f   :  { %2195 = vmatprep.subr.bf16.mxu1 %v2350_v26 }
  0x21   :  { %501 = vperm.xlu0 %2341, %v2579_v35  }
  0x22   :  { %2196 = vmatpush3.bf16.msra.mxu1 %v2350_v26  ;;  %506 = vperm.xlu1 %2342, %v2584_v36  }
  0x25   :  { %2198 = vmatmul.mubr.bf16.vlgmr.msra.gmra.mrb[0].mxu1 %v2352_v32  ;;  %591 = vperm.xlu0 %2341, %v108_v38  }
  0x26   :  { %2201 = vmatprep.mubr.bf16.mxu1 %v2353_v33  ;;  %596 = vperm.xlu1 %2342, %v109_v37  }
  0x29   :  { %511 = vperm.xlu0 %2341, %v2636_v52  }
  0x2d   :  { %2202 = vmatmul.mubr.bf16.gmra.mrb[4].mxu1 %v2354_v46 }
  0x2e   :  { %2205 = vmatprep.mubr.bf16.mxu1 %v2355_v50 }
  0x2f   :  { %16 = vsyncpa [#allocation4], 0  ;;  %516 = vperm.xlu1 %2342, %v2650_v56   ;;  %v2356_v57 = vld [vmem:[%s3654_s1 + $0x28] sm:$0xff]   ;;  %v2357_v58 = vld [vmem:[%s3654_s1 + $0x30] sm:$0xff]   ;;  %601 = vperm.xlu0 %2341, %v110_v39   ;;  %vm1494_vm0 = vcmp.gt.f32.partialorder %v2474_v6, 0.0  ;;  %vm1495_vm1 = vcmp.gt.f32.partialorder %v2486_v9, 0.0 }
  0x30   :  { %v2663_v59 = vld [vmem:[%s3655_s2 + $0x50] sm:$0xff]  ;;  %v2668_v60 = vld [vmem:[%s3655_s2 + $0x58] sm:$0xff]  ;;  %v2359_v62 = vld [vmem:[%s3654_s1 + $0x40] sm:$0xff]   ;;  %v1526_v7 = vsel %vm1494_vm0, 1, %v2399_v3  ;;  %v1527_v8 = vsel %vm1495_vm1, 1, %v2399_v3  ;;  %vm1496_vm2 = vcmp.gt.f32.partialorder %v2519_v19, 0.0 }
  0x31   :  { %v2358_v61 = vld [vmem:[%s3654_s1 + $0x38] sm:$0xff]   ;;  %v2681_v63 = vld [vmem:[%s3655_s2 + $0x60] sm:$0xff]  ;;  %v2686_v0 = vld [vmem:[%s3655_s2 + $0x68] sm:$0xff]  ;;  %vm1497_vm3 = vcmp.gt.f32.partialorder %v2524_v20, 0.0  ;;  %v1528_v9 = vsel %vm1496_vm2, 1, %v2399_v3  ;;  %vm1498_vm4 = vcmp.gt.f32.partialorder %v2549_v27, 0.0 }
  0x32   :  { %v2360_v1 = vld [vmem:[%s3654_s1 + $0x48] sm:$0xff]   ;;  %v2361_v2 = vld [vmem:[%s3654_s1 + $0x50] sm:$0xff]   ;;  %v99_v5 = vld [vmem:[%s3655_s2 + $0x78] sm:$0xff]  ;;  %v1529_v12 = vsel %vm1497_vm3, 1, %v2399_v3  ;;  %vm1499_vm5 = vcmp.gt.f32.partialorder %v2554_v28, 0.0  ;;  %v1530_v13 = vsel %vm1498_vm4, 1, %v2399_v3 }
  0x33   :  { %606 = vperm.xlu1 %2342, %v111_v40   ;;  %521 = vperm.xlu0 %2341, %v2663_v59   ;;  %v98_v4 = vld [vmem:[%s3655_s2 + $0x70] sm:$0xff]  ;;  %v2362_v6 = vld [vmem:[%s3654_s1 + $0x58] sm:$0xff]   ;;  %v2363_v10 = vld [vmem:[%s3654_s1 + $0x60] sm:$0xff]   ;;  %v1531_v15 = vsel %vm1499_vm5, 1, %v2399_v3  ;;  %vm1500_vm6 = vcmp.gt.f32.partialorder %v2579_v35, 0.0  ;;  %vm1501_vm7 = vcmp.gt.f32.partialorder %v2584_v36, 0.0 }
  0x34   :  { %v2364_v16 = vld [vmem:[%s3654_s1 + $0x68] sm:$0xff]   ;;  %v2365_v19 = vld [vmem:[%s3654_s1 + $0x70] sm:$0xff]   ;;  %v1532_v20 = vsel %vm1500_vm6, 1, %v2399_v3  ;;  %v1533_v21 = vsel %vm1501_vm7, 1, %v2399_v3  ;;  %vm1502_vm8 = vcmp.gt.f32.partialorder %v2636_v52, 0.0  ;;  %vm1503_vm9 = vcmp.gt.f32.partialorder %v2650_v56, 0.0 }
  0x35   :  { %2206 = vmatmul.mubr.bf16.gmra.mrb[8].mxu1 %v2356_v57  ;;  %v1534_v22 = vsel %vm1502_vm8, 1, %v2399_v3  ;;  %v1535_v24 = vsel %vm1503_vm9, 1, %v2399_v3  ;;  %vm1504_vm10 = vcmp.gt.f32.partialorder %v2663_v59, 0.0  ;;  %v2366_v25 = vld [vmem:[%s3654_s1 + $0x78] sm:$0xff]   ;;  %vm1505_vm11 = vcmp.gt.f32.partialorder %v2668_v60, 0.0 }
  0x36   :  { %2209 = vmatprep.mubr.bf16.mxu1 %v2357_v58  ;;  %v1536_v26 = vsel %vm1504_vm10, 1, %v2399_v3  ;;  %v1537_v27 = vsel %vm1505_vm11, 1, %v2399_v3  ;;  %vm1506_vm12 = vcmp.gt.f32.partialorder %v2681_v63, 0.0  ;;  %vm1507_vm13 = vcmp.gt.f32.partialorder %v2686_v0, 0.0 }
  0x37   :  { %526 = vperm.xlu1 %2342, %v2668_v60   ;;  %611 = vperm.xlu0 %2341, %v112_v41   ;;  %v1538_v28 = vsel %vm1506_vm12, 1, %v2399_v3  ;;  %v1539_v31 = vsel %vm1507_vm13, 1, %v2399_v3  ;;  %vm1508_vm14 = vcmp.gt.f32.partialorder %v98_v4, 0.0  ;;  %vm1509_vm15 = vcmp.gt.f32.partialorder %v99_v5, 0.0 }
  0x38   :  { %v1540_v32 = vsel %vm1508_vm14, 1, %v2399_v3  ;;  %v1541_v33 = vsel %vm1509_vm15, 1, %v2399_v3  ;;  %v2766_v3 = vld [vmem:[%s3653_s0 + $0x8] sm:$0xff]  ;;  %vm2401_vm2 = vmmov 0  }
  0x39   :  { %3773 = vst [vmem:[#allocation6_spill] sm:$0xff] %v2766_v3 }
  0x3b   :  { %616 = vperm.xlu1 %2342, %v113_v42   ;;  %531 = vperm.xlu0 %2341, %v2681_v63  }
  0x3d   :  { %2210 = vmatmul.mubr.bf16.gmra.mrb[12].mxu1 %v2358_v61 }
  0x3e   :  { %2213 = vmatprep.mubr.bf16.mxu1 %v2359_v62 }
  0x3f   :  { %536 = vperm.xlu1 %2342, %v2686_v0   ;;  %621 = vperm.xlu0 %2341, %v114_v43  }
  0x43   :  { %626 = vperm.xlu1 %2342, %v115_v45   ;;  %541 = vperm.xlu0 %2341, %v98_v4  }
  0x45   :  { %2214 = vmatmul.mubr.bf16.gmra.mrb[16].mxu1 %v2360_v1 }
  0x46   :  { %2217 = vmatprep.mubr.bf16.mxu1 %v2361_v2 }
  0x47   :  { %546 = vperm.xlu1 %2342, %v99_v5   ;;  %1559 = vperm.xlu0 %2341, %v1526_v7  }
  0x4b   :  { %1562 = vperm.xlu1 %2342, %v1527_v8   ;;  %1565 = vperm.xlu0 %2341, %v1528_v9  }
  0x4d   :  { %2218 = vmatmul.mubr.bf16.gmra.mrb[20].mxu1 %v2362_v6 }
  0x4e   :  { %2221 = vmatprep.mubr.bf16.mxu1 %v2363_v10 }
  0x4f   :  { %1568 = vperm.xlu1 %2342, %v1529_v12   ;;  %1571 = vperm.xlu0 %2341, %v1530_v13  }
  0x53   :  { %1574 = vperm.xlu1 %2342, %v1531_v15   ;;  %1577 = vperm.xlu0 %2341, %v1532_v20  }
  0x55   :  { %2222 = vmatmul.mubr.bf16.gmra.mrb[24].mxu1 %v2364_v16 }
  0x56   :  { %2225 = vmatprep.mubr.bf16.mxu1 %v2365_v19 }
  0x57   :  { %1580 = vperm.xlu1 %2342, %v1533_v21   ;;  %1583 = vperm.xlu0 %2341, %v1534_v22  }
  0x5b   :  { %1586 = vperm.xlu1 %2342, %v1535_v24   ;;  %1589 = vperm.xlu0 %2341, %v1536_v26  }
  0x5d   :  { %2226 = vmatmul.mubr.bf16.gmra.mrb[28].mxu1 %v2366_v25 }
  0x5f   :  { %1592 = vperm.xlu1 %2342, %v1537_v27   ;;  %1595 = vperm.xlu0 %2341, %v1538_v28  }
  0x63   :  { %1598 = vperm.xlu1 %2342, %v1539_v31   ;;  %1601 = vperm.xlu0 %2341, %v1540_v32  }
  0x67   :  { %1604 = vperm.xlu1 %2342, %v1541_v33   ;;  %1607 = vperm.xlu0 %2341, %v2492_v11   ;;  %v3663_v11 = vunpack.c.l.s8.bf16 %v2766_v3 }
  0x69   :  { %709 = vmatprep.mubr.bf16.mxu1 %v3663_v11 }
  0x6b   :  { %1610 = vperm.xlu1 %2342, %v2501_v14   ;;  %1613 = vperm.xlu0 %2341, %v2514_v18  }
  0x6f   :  { %1616 = vperm.xlu1 %2342, %v2511_v17   ;;  %1619 = vperm.xlu0 %2341, %v2557_v29  }
  0x73   :  { %1622 = vperm.xlu1 %2342, %v2534_v23   ;;  %1625 = vperm.xlu0 %2341, %v2574_v34  }
  0x77   :  { %1628 = vperm.xlu1 %2342, %v2560_v30   ;;  %1631 = vperm.xlu0 %2341, %v2619_v47  }
  0x7b   :  { %1634 = vperm.xlu1 %2342, %v2608_v44   ;;  %1637 = vperm.xlu0 %2341, %v2625_v49  }
  0x7f   :  { %1640 = vperm.xlu1 %2342, %v2622_v48   ;;  %1643 = vperm.xlu0 %2341, %v2639_v53  }
  0x83   :  { %1646 = vperm.xlu1 %2342, %v2631_v51   ;;  %1649 = vperm.xlu0 %2341, %v2645_v55  }
  0x84   :  { %v2773_v17 = vpop.permute.xlu0 %551 }
  0x85   :  { %v2771_v14 = vpop.permute.xlu1 %471 }
  0x86   :  { %3774 = vst [vmem:[#allocation7_spill] sm:$0xff] %v2771_v14 }
  0x87   :  { %1652 = vperm.xlu1 %2342, %v2642_v54  }
  0x88   :  { %v2777_v23 = vpop.permute.xlu0 %556 }
  0x89   :  { %v2775_v18 = vpop.permute.xlu1 %476 }
  0x8a   :  { %3775 = vst [vmem:[#allocation8_spill] sm:$0xff] %v2775_v18 }
  0x8c   :  { %v2781_v30 = vpop.permute.xlu0 %561 }
  0x8d   :  { %v2779_v29 = vpop.permute.xlu1 %566 }
  0x90   :  { %v2785_v35 = vpop.permute.xlu0 %481 }
  0x91   :  { %v2783_v34 = vpop.permute.xlu1 %486 }
  0x94   :  { %v2789_v37 = vpop.permute.xlu0 %571 }
  0x95   :  { %v2787_v36 = vpop.permute.xlu1 %576 }
  0x96   :  { %3776 = vst [vmem:[#allocation9_spill] sm:$0xff] %v2787_v36 }
  0x98   :  { %v2793_v43 = vpop.permute.xlu0 %491 }
  0x99   :  { %v2791_v40 = vpop.permute.xlu1 %496 }
  0x9c   :  { %v2797_v47 = vpop.permute.xlu0 %581 }
  0x9d   :  { %v2795_v44 = vpop.permute.xlu1 %586  ;;  %3778 = vst [vmem:[#allocation11_spill] sm:$0xff] %v2797_v47 }
  0x9e   :  { %3777 = vst [vmem:[#allocation10_spill] sm:$0xff] %v2795_v44 }
  0xa0   :  { %v2801_v51 = vpop.permute.xlu0 %501 }
  0xa1   :  { %v2799_v50 = vpop.permute.xlu1 %506 }
  0xa4   :  { %v2811_v57 = vpop.permute.xlu0 %591 }
  0xa5   :  { %v2809_v56 = vpop.permute.xlu1 %596  ;;  %3780 = vst [vmem:[#allocation13_spill] sm:$0xff] %v2811_v57 }
  0xa6   :  { %3779 = vst [vmem:[#allocation12_spill] sm:$0xff] %v2809_v56 }
  0xa8   :  { %v2823_v63 = vpop.permute.xlu0 %511 }
  0xae   :  { %v2817_v60 = vpop.permute.xlu1 %516  ;;  %v2827_v4 = vpop.permute.xlu0 %601 }
  0xaf   :  { %3782 = vst [vmem:[#allocation15_spill] sm:$0xff] %v2827_v4 }
  0xb2   :  { %v2825_v0 = vpop.permute.xlu1 %606  ;;  %v2856_v21 = vpop.permute.xlu0 %521 }
  0xb3   :  { %3781 = vst [vmem:[#allocation14_spill] sm:$0xff] %v2825_v0 }
  0xb6   :  { %v2844_v13 = vpop.permute.xlu1 %526 }
  0xba   :  { %v2868_v33 = vpop.permute.xlu1 %616 }
  0xbb   :  { %3783 = vst [vmem:[#allocation16_spill] sm:$0xff] %v2868_v33 }
  0xf8   :  { %v2199_v38 = vpop.f32.mrb[0].mxu1 }
  0xf9   :  { %v342_v39 = vpop.f32.mrb[1].mxu1  ;;  %v2861_v25 = vmul.f32 %v2199_v38, %v2785_v35 }
  0xfa   :  { %v2200_v41 = vpop.f32.mrb[2].mxu1  ;;  %v2842_v12 = vmul.f32 %v2771_v14, %v342_v39 }
  0xfb   :  { %v345_v42 = vpop.f32.mrb[3].mxu1  ;;  %v2852_v19 = vmul.f32 %v2200_v41, %v2783_v34 }
  0xfc   :  { %v2830_v7 = vmul.f32 %v2775_v18, %v345_v42 }
  0xfd   :  { %v662_v28 = vpack.c.bf16 %v2852_v19, %v2861_v25 }
  0xfe   :  { %v661_v20 = vpack.c.bf16 %v2830_v7, %v2842_v12 }
 0x100   :  { %v2203_v45 = vpop.f32.mrb[4].mxu1 }
 0x101   :  { %v358_v46 = vpop.f32.mrb[5].mxu1 }
 0x102   :  { %v2204_v48 = vpop.f32.mrb[6].mxu1  ;;  %v2880_v42 = vmul.f32 %v2793_v43, %v358_v46 }
 0x103   :  { %v361_v49 = vpop.f32.mrb[7].mxu1 }
 0x104   :  { %v2866_v31 = vmul.f32 %v2791_v40, %v361_v49 }
 0x108   :  { %v2803_v52 = vpop.f32.mrb[8].mxu1 }
 0x109   :  { %v2805_v53 = vpop.f32.mrb[9].mxu1 }
 0x10a   :  { %v2807_v54 = vpop.f32.mrb[10].mxu1 }
 0x10b   :  { %v377_v55 = vpop.f32.mrb[11].mxu1 }
 0x110   :  { %v2813_v58 = vpop.f32.mrb[12].mxu1 }
 0x111   :  { %v2815_v59 = vpop.f32.mrb[13].mxu1 }
 0x112   :  { %v2819_v61 = vpop.f32.mrb[14].mxu1 }
 0x113   :  { %v2821_v62 = vpop.f32.mrb[15].mxu1 }
 0x118   :  { %v2215_v1 = vpop.f32.mrb[16].mxu1 }
 0x119   :  { %v406_v2 = vpop.f32.mrb[17].mxu1  ;;  %v2847_v15 = vmul.f32 %v2215_v1, %v2781_v30  ;;  %v2882_v1 = vpop.permute.xlu0 %611 }
 0x11a   :  { %v2216_v5 = vpop.f32.mrb[18].mxu1  ;;  %v2833_v6 = vmul.f32 %v2773_v17, %v406_v2  ;;  %3784 = vst [vmem:[#allocation17_spill] sm:$0xff] %v2882_v1 }
 0x11b   :  { %v409_v8 = vpop.f32.mrb[19].mxu1  ;;  %v2836_v10 = vmul.f32 %v2216_v5, %v2779_v29  ;;  %v2890_v5 = vmul.f32 %v2204_v48, %v2799_v50 }
 0x11c   :  { %v2839_v9 = vmul.f32 %v2777_v23, %v409_v8  ;;  %v663_v8 = vpack.c.bf16 %v2866_v31, %v2880_v42 }
 0x11d   :  { %v670_v22 = vpack.c.bf16 %v2836_v10, %v2847_v15 }
 0x11e   :  { %v669_v16 = vpack.c.bf16 %v2839_v9, %v2833_v6 }
 0x120   :  { %v2219_v24 = vpop.f32.mrb[20].mxu1  ;;  %1916 = vmatprep.subr.bf16.mxu1 %v669_v16 }
 0x121   :  { %v422_v26 = vpop.f32.mrb[21].mxu1  ;;  %1917 = vmatpush3.bf16.msra.mxu1 %v661_v20  ;;  %v2885_v49 = vmul.f32 %v2219_v24, %v2797_v47  ;;  %v2897_v20 = vmul.f32 %v2203_v45, %v2801_v51  ;;  %v2899_v24 = vpop.permute.xlu1 %536 }
 0x122   :  { %v2220_v27 = vpop.f32.mrb[22].mxu1  ;;  %1918 = vmatprep.subr.bf16.mxu1 %v670_v22  ;;  %v2871_v39 = vmul.f32 %v2789_v37, %v422_v26 }
 0x123   :  { %v425_v32 = vpop.f32.mrb[23].mxu1  ;;  %v2874_v41 = vmul.f32 %v2220_v27, %v2795_v44  ;;  %v664_v48 = vpack.c.bf16 %v2890_v5, %v2897_v20  ;;  %v2904_v27 = vmul.f32 %v2817_v60, %v377_v55 }
 0x124   :  { %v2877_v38 = vmul.f32 %v2787_v36, %v425_v32  ;;  %v2906_v32 = vpop.permute.xlu0 %531 }
 0x125   :  { %1919 = vmatpush3.bf16.msra.mxu1 %v662_v28  ;;  %v672_v16 = vpack.c.bf16 %v2874_v41, %v2885_v49 }
 0x126   :  { %v671_v2 = vpack.c.bf16 %v2877_v38, %v2871_v39 }
 0x128   :  { %v2223_v46 = vpop.f32.mrb[24].mxu1  ;;  %1920 = vmatprep.subr.bf16.mxu1 %v671_v2 }
 0x129   :  { %v438_v22 = vpop.f32.mrb[25].mxu1  ;;  %1921 = vmatpush3.bf16.msra.mxu1 %v663_v8  ;;  %v2922_v55 = vmul.f32 %v2223_v46, %v2827_v4  ;;  %v2938_v46 = vmul.f32 %v2803_v52, %v2856_v21  ;;  %v2940_v4 = vpop.permute.xlu0 %621 }
 0x12a   :  { %v2224_v26 = vpop.f32.mrb[26].mxu1  ;;  %1922 = vmatprep.subr.bf16.mxu1 %v672_v16  ;;  %v2909_v2 = vmul.f32 %v2811_v57, %v438_v22  ;;  %v2919_v16 = vmul.f32 %v2823_v63, %v2805_v53  ;;  %v2928_v22 = vmul.f32 %v2807_v54, %v2844_v13  ;;  %3790 = vst [vmem:[#allocation23_spill] sm:$0xff] %v2940_v4 }
 0x12b   :  { %v441_v28 = vpop.f32.mrb[27].mxu1  ;;  %v2912_v45 = vmul.f32 %v2224_v26, %v2825_v0  ;;  %3788 = vst [vmem:[#allocation21_spill] sm:$0xff] %v2922_v55 }
 0x12c   :  { %3785 = vst [vmem:[#allocation18_spill] sm:$0xff] %v2909_v2  ;;  %v2915_v8 = vmul.f32 %v2809_v56, %v441_v28  ;;  %v665_v26 = vpack.c.bf16 %v2904_v27, %v2919_v16  ;;  %v2932_v28 = vpop.permute.xlu1 %626  ;;  %v666_v56 = vpack.c.bf16 %v2928_v22, %v2938_v46 }
 0x12d   :  { %3786 = vst [vmem:[#allocation19_spill] sm:$0xff] %v2912_v45  ;;  %1923 = vmatpush3.bf16.msra.mxu1 %v664_v48  ;;  %3789 = vst [vmem:[#allocation22_spill] sm:$0xff] %v2932_v28  ;;  %v674_v53 = vpack.c.bf16 %v2912_v45, %v2922_v55 }
 0x12e   :  { %3787 = vst [vmem:[#allocation20_spill] sm:$0xff] %v2915_v8  ;;  %v673_v11 = vpack.c.bf16 %v2915_v8, %v2909_v2  ;;  %v2946_v8 = vmul.f32 %v2899_v24, %v2821_v62 }
 0x130   :  { %v2227_v0 = vpop.f32.mrb[28].mxu1  ;;  %1924 = vmatprep.subr.bf16.mxu1 %v673_v11  ;;  %v2961_v55 = vpop.permute.xlu1 %546 }
 0x131   :  { %v454_v48 = vpop.f32.mrb[29].mxu1  ;;  %1925 = vmatpush3.bf16.msra.mxu1 %v665_v26  ;;  %v2964_v62 = vmul.f32 %v2227_v0, %v2940_v4  ;;  %v2368_v0 = vld [vmem:[%s3658_s5 + $0x8] sm:$0xff]   ;;  %v2991_v4 = vld [vmem:[%s3653_s0] sm:$0xff] }
 0x132   :  { %v2228_v54 = vpop.f32.mrb[30].mxu1  ;;  %1926 = vmatprep.subr.bf16.mxu1 %v674_v53  ;;  %v2949_v11 = vmul.f32 %v2882_v1, %v454_v48  ;;  %v2959_v53 = vmul.f32 %v2906_v32, %v2815_v59  ;;  %v2367_v59 = vld [vmem:[%s3658_s5] sm:$0xff]   ;;  %3795 = vst [vmem:[#allocation28_spill] sm:$0xff] %v2991_v4 }
 0x133   :  { %v457_v45 = vpop.f32.mrb[31].mxu1  ;;  %v2952_v52 = vmul.f32 %v2228_v54, %v2932_v28  ;;  %3794 = vst [vmem:[#allocation27_spill] sm:$0xff] %v2964_v62  ;;  %v2970_v54 = vmul.f32 %v2819_v61, %v2961_v55  ;;  %v2974_v28 = vpop.permute.xlu0 %541  ;;  %2229 = vmatprep.subr.bf16.mxu0 %v2367_v59 }
 0x134   :  { %3791 = vst [vmem:[#allocation24_spill] sm:$0xff] %v2949_v11  ;;  %v2955_v26 = vmul.f32 %v2868_v33, %v457_v45  ;;  %v667_v45 = vpack.c.bf16 %v2946_v8, %v2959_v53  ;;  %v2986_v61 = vmul.f32 %v2813_v58, %v2974_v28  ;;  %2230 = vmatpush3.bf16.msra.mxu0 %v2367_v59  ;;  %v3004_v58 = vld [vmem:[%s3653_s0 + $0x18] sm:$0xff]  ;;  %v3015_v59 = vld [vmem:[%s3653_s0 + $0x10] sm:$0xff] }
 0x135   :  { %3792 = vst [vmem:[#allocation25_spill] sm:$0xff] %v2952_v52  ;;  %1927 = vmatpush3.bf16.msra.mxu1 %v666_v56  ;;  %v676_v56 = vpack.c.bf16 %v2952_v52, %v2964_v62  ;;  %v3684_v52 = vunpack.c.l.s8.bf16 %v2991_v4  ;;  %2231 = vmatprep.subr.bf16.mxu0 %v2368_v0  ;;  %v3681_v62 = vunpack.c.h.s8.bf16 %v2766_v3  ;;  %3796 = vst [vmem:[#allocation29_spill] sm:$0xff] %v3004_v58 }
 0x136   :  { %3793 = vst [vmem:[#allocation26_spill] sm:$0xff] %v2955_v26  ;;  %v675_v48 = vpack.c.bf16 %v2955_v26, %v2949_v11  ;;  %3797 = vst [vmem:[#allocation30_spill] sm:$0xff] %v3015_v59 }
 0x138   :  { %1928 = vmatprep.subr.bf16.mxu1 %v675_v48  ;;  %v668_v48 = vpack.c.bf16 %v2970_v54, %v2986_v61  ;;  %2232 = vmatpush3.bf16.msra.mxu0 %v2368_v0  ;;  %v3682_v0 = vunpack.c.l.s8.bf16 %v3015_v59 }
 0x139   :  { %1929 = vmatpush3.bf16.msra.mxu1 %v667_v45  ;;  %v3679_v45 = vunpack.c.h.s8.bf16 %v2991_v4 }
 0x13a   :  { %1930 = vmatprep.subr.bf16.mxu1 %v676_v56  ;;  %v3680_v56 = vunpack.c.l.s8.bf16 %v3004_v58 }
 0x13d   :  { %1931 = vmatpush3.bf16.msra.mxu1 %v668_v48  ;;  %v3683_v48 = vunpack.c.h.s8.bf16 %v3004_v58 }
 0x140   :  { %710 = vmatmul.mubr.bf16.vlgmr.msra.gmra.mrb[32].mxu1 %v3684_v52 }
 0x141   :  { %717 = vmatprep.mubr.bf16.mxu1 %v3681_v62 }
 0x148   :  { %718 = vmatmul.mubr.bf16.gmra.mrb[36].mxu1 %v3679_v45  ;;  %v3026_v45 = vld [vmem:[%s3653_s0 + $0x28] sm:$0xff] }
 0x149   :  { %725 = vmatprep.mubr.bf16.mxu1 %v3680_v56  ;;  %3798 = vst [vmem:[#allocation31_spill] sm:$0xff] %v3026_v45  ;;  %v3685_v56 = vunpack.c.h.s8.bf16 %v3015_v59  ;;  %v3686_v62 = vunpack.c.l.s8.bf16 %v3026_v45  ;;  %v3690_v52 = vunpack.c.h.s8.bf16 %v3026_v45 }
 0x150   :  { %726 = vmatmul.mubr.bf16.gmra.mrb[40].mxu1 %v3682_v0  ;;  %v3037_v0 = vld [vmem:[%s3653_s0 + $0x20] sm:$0xff] }
 0x151   :  { %733 = vmatprep.mubr.bf16.mxu1 %v3683_v48  ;;  %3799 = vst [vmem:[#allocation32_spill] sm:$0xff] %v3037_v0  ;;  %v3689_v48 = vunpack.c.l.s8.bf16 %v3037_v0 }
 0x158   :  { %734 = vmatmul.mubr.bf16.gmra.mrb[44].mxu1 %v3685_v56  ;;  %v3048_v56 = vld [vmem:[%s3653_s0 + $0x38] sm:$0xff] }
 0x159   :  { %741 = vmatprep.mubr.bf16.mxu1 %v3686_v62  ;;  %3800 = vst [vmem:[#allocation33_spill] sm:$0xff] %v3048_v56  ;;  %v3693_v62 = vunpack.c.h.s8.bf16 %v3037_v0  ;;  %v3694_v59 = vunpack.c.l.s8.bf16 %v3048_v56  ;;  %v3698_v45 = vunpack.c.h.s8.bf16 %v3048_v56 }
 0x160   :  { %742 = vmatmul.mubr.bf16.gmra.mrb[48].mxu1 %v3689_v48  ;;  %v3059_v48 = vld [vmem:[%s3653_s0 + $0x30] sm:$0xff] }
 0x161   :  { %749 = vmatprep.mubr.bf16.mxu1 %v3690_v52  ;;  %3801 = vst [vmem:[#allocation34_spill] sm:$0xff] %v3059_v48  ;;  %v3697_v52 = vunpack.c.l.s8.bf16 %v3059_v48 }
 0x168   :  { %750 = vmatmul.mubr.bf16.gmra.mrb[52].mxu1 %v3693_v62  ;;  %v3070_v62 = vld [vmem:[%s3653_s0 + $0x48] sm:$0xff] }
 0x169   :  { %757 = vmatprep.mubr.bf16.mxu1 %v3694_v59  ;;  %3802 = vst [vmem:[#allocation35_spill] sm:$0xff] %v3070_v62  ;;  %v3701_v59 = vunpack.c.h.s8.bf16 %v3059_v48  ;;  %v3702_v0 = vunpack.c.l.s8.bf16 %v3070_v62  ;;  %v3706_v56 = vunpack.c.h.s8.bf16 %v3070_v62 }
 0x170   :  { %758 = vmatmul.mubr.bf16.gmra.mrb[56].mxu1 %v3697_v52  ;;  %v3081_v52 = vld [vmem:[%s3653_s0 + $0x40] sm:$0xff] }
 0x171   :  { %765 = vmatprep.mubr.bf16.mxu1 %v3698_v45  ;;  %3803 = vst [vmem:[#allocation36_spill] sm:$0xff] %v3081_v52  ;;  %v3705_v45 = vunpack.c.l.s8.bf16 %v3081_v52 }
 0x178   :  { %766 = vmatmul.mubr.bf16.gmra.mrb[60].mxu1 %v3701_v59  ;;  %v3092_v59 = vld [vmem:[%s3653_s0 + $0x58] sm:$0xff] }
 0x179   :  { %773 = vmatprep.mubr.bf16.mxu1 %v3702_v0  ;;  %3804 = vst [vmem:[#allocation37_spill] sm:$0xff] %v3092_v59  ;;  %v3709_v0 = vunpack.c.h.s8.bf16 %v3081_v52  ;;  %v3710_v48 = vunpack.c.l.s8.bf16 %v3092_v59  ;;  %v3715_v62 = vunpack.c.h.s8.bf16 %v3092_v59  ;;  %v2372_v59 = vld [vmem:[%s3658_s5 + $0x28] sm:$0xff]  }
 0x180   :  { %774 = vmatmul.mubr.bf16.gmra.mrb[64].mxu1 %v3705_v45  ;;  %v3103_v45 = vld [vmem:[%s3653_s0 + $0x50] sm:$0xff] }
 0x181   :  { %781 = vmatprep.mubr.bf16.mxu1 %v3706_v56  ;;  %3805 = vst [vmem:[#allocation38_spill] sm:$0xff] %v3103_v45  ;;  %v3716_v56 = vunpack.c.l.s8.bf16 %v3103_v45  ;;  %v3719_v52 = vunpack.c.h.s8.bf16 %v3103_v45 }
 0x188   :  { %782 = vmatmul.mubr.bf16.gmra.mrb[68].mxu1 %v3709_v0  ;;  %v3114_v0 = vld [vmem:[%s3653_s0 + $0x68] sm:$0xff] }
 0x189   :  { %789 = vmatprep.mubr.bf16.mxu1 %v3710_v48  ;;  %3806 = vst [vmem:[#allocation39_spill] sm:$0xff] %v3114_v0  ;;  %v2369_v48 = vld [vmem:[%s3658_s5 + $0x10] sm:$0xff]   ;;  %v3720_v58 = vunpack.c.l.s8.bf16 %v3114_v0 }
 0x18a   :  { %2233 = vmatprep.subr.bf16.mxu0 %v2369_v48 }
 0x18b   :  { %2234 = vmatpush3.bf16.msra.mxu0 %v2369_v48  ;;  %v2371_v48 = vld [vmem:[%s3658_s5 + $0x20] sm:$0xff]  }
 0x190   :  { %790 = vmatmul.mubr.bf16.gmra.mrb[72].mxu1 %v3716_v56  ;;  %v2370_v56 = vld [vmem:[%s3658_s5 + $0x18] sm:$0xff]  }
 0x191   :  { %797 = vmatprep.mubr.bf16.mxu1 %v3715_v62  ;;  %v3128_v62 = vld [vmem:[%s3653_s0 + $0x60] sm:$0xff]  ;;  %2235 = vmatprep.subr.bf16.mxu0 %v2370_v56 }
 0x192   :  { %3807 = vst [vmem:[#allocation40_spill] sm:$0xff] %v3128_v62  ;;  %v3726_v45 = vunpack.c.l.s8.bf16 %v3128_v62  ;;  %2236 = vmatpush3.bf16.msra.mxu0 %v2370_v56  ;;  %v2373_v56 = vld [vmem:[%s3658_s5 + $0x30] sm:$0xff]   ;;  %v3730_v4 = vunpack.c.h.s8.bf16 %v3128_v62 }
 0x193   :  { %2237 = vmatprep.subr.bf16.mxu0 %v2371_v48 }
 0x196   :  { %2238 = vmatpush3.bf16.msra.mxu0 %v2371_v48 }
 0x197   :  { %2239 = vmatprep.subr.bf16.mxu0 %v2372_v59 }
 0x198   :  { %798 = vmatmul.mubr.bf16.gmra.mrb[76].mxu1 %v3719_v52  ;;  %v3725_v52 = vunpack.c.h.s8.bf16 %v3114_v0 }
 0x199   :  { %805 = vmatprep.mubr.bf16.mxu1 %v3720_v58  ;;  %v3145_v58 = vld [vmem:[%s3653_s0 + $0x78] sm:$0xff] }
 0x19a   :  { %3808 = vst [vmem:[#allocation41_spill] sm:$0xff] %v3145_v58  ;;  %v3729_v48 = vunpack.c.l.s8.bf16 %v3145_v58  ;;  %2240 = vmatpush3.bf16.msra.mxu0 %v2372_v59  ;;  %v3740_v59 = vunpack.c.h.s8.bf16 %v3145_v58 }
 0x19b   :  { %2241 = vmatprep.subr.bf16.mxu0 %v2373_v56 }
 0x19e   :  { %2242 = vmatpush3.bf16.msra.mxu0 %v2373_v56 }
 0x1a0   :  { %806 = vmatmul.mubr.bf16.gmra.mrb[80].mxu1 %v3726_v45  ;;  %v2374_v45 = vld [vmem:[%s3658_s5 + $0x38] sm:$0xff]  }
 0x1a1   :  { %813 = vmatprep.mubr.bf16.mxu1 %v3725_v52  ;;  %v3162_v52 = vld [vmem:[%s3653_s0 + $0x70] sm:$0xff]  ;;  %2243 = vmatprep.subr.bf16.mxu0 %v2374_v45 }
 0x1a2   :  { %3809 = vst [vmem:[#allocation42_spill] sm:$0xff] %v3162_v52  ;;  %v3741_v0 = vunpack.c.l.s8.bf16 %v3162_v52  ;;  %2244 = vmatpush3.bf16.msra.mxu0 %v2374_v45  ;;  %v3180_v45 = vld [vmem:[%s3657_s4] ss:$0 sm:$0xff] }
 0x1a8   :  { %814 = vmatmul.mubr.bf16.gmra.mrb[84].mxu1 %v3730_v4 }
 0x1a9   :  { %821 = vmatprep.mubr.bf16.mxu1 %v3729_v48  ;;  %v3744_v48 = vunpack.c.h.s8.bf16 %v3162_v52 }
 0x1b0   :  { %822 = vmatmul.mubr.bf16.gmra.mrb[88].mxu1 %v3741_v0 }
 0x1b1   :  { %829 = vmatprep.mubr.bf16.mxu1 %v3740_v59 }
 0x1b8   :  { %830 = vmatmul.mubr.bf16.gmra.mrb[92].mxu1 %v3744_v48 }
 0x213   :  { %v1932_v56 = vpop.f32.mrb[32].mxu1 }
 0x214   :  { %v1933_v4 = vpop.f32.mrb[33].mxu1 }
 0x215   :  { %v1934_v62 = vadd.f32 %v1933_v4, %v1932_v56  ;;  %v1935_v3 = vpop.f32.mrb[34].mxu1 }
 0x216   :  { %v1936_v33 = vpop.f32.mrb[35].mxu1 }
 0x217   :  { %v712_v26 = vadd.f32 %v1934_v62, %v2842_v12  ;;  %v1937_v1 = vadd.f32 %v1936_v33, %v1935_v3 }
 0x219   :  { %v715_v59 = vadd.f32 %v1937_v1, %v2830_v7  ;;  %v838_v0 = vmul.f32 %v712_v26, %v2771_v14 }
 0x21b   :  { %v1938_v58 = vpop.f32.mrb[36].mxu1  ;;  %v839_v48 = vmul.f32 %v715_v59, %v2775_v18  ;;  %v877_v52 = vadd.f32 %v3180_v45, %v838_v0 }
 0x21c   :  { %v1939_v4 = vpop.f32.mrb[37].mxu1 }
 0x21d   :  { %v1940_v56 = vadd.f32 %v1939_v4, %v1938_v58  ;;  %v1941_v11 = vpop.f32.mrb[38].mxu1  ;;  %v878_v12 = vadd.f32 %v3180_v45, %v839_v48  ;;  %v909_v57 = vmax.f32 %v877_v52, 0.0 }
 0x21e   :  { %v1942_v3 = vpop.f32.mrb[39].mxu1 }
 0x21f   :  { %v720_v33 = vadd.f32 %v1940_v56, %v2861_v25  ;;  %v1943_v62 = vadd.f32 %v1942_v3, %v1941_v11  ;;  %v910_v2 = vmax.f32 %v878_v12, 0.0 }
 0x221   :  { %v840_v7 = vmul.f32 %v720_v33, %v2785_v35  ;;  %v723_v1 = vadd.f32 %v1943_v62, %v2852_v19  ;;  %v941_v26 = vpack.c.bf16 %v910_v2, %v909_v57 }
 0x223   :  { %v841_v59 = vmul.f32 %v723_v1, %v2783_v34  ;;  %v1944_v14 = vpop.f32.mrb[40].mxu1  ;;  %2245 = vmatprep.mubr.bf16.mxu0 %v941_v26  ;;  %v879_v58 = vadd.f32 %v3180_v45, %v840_v7 }
 0x224   :  { %v1945_v0 = vpop.f32.mrb[41].mxu1 }
 0x225   :  { %v1946_v4 = vadd.f32 %v1945_v0, %v1944_v14  ;;  %v1947_v48 = vpop.f32.mrb[42].mxu1  ;;  %v880_v18 = vadd.f32 %v3180_v45, %v841_v59  ;;  %v911_v56 = vmax.f32 %v879_v58, 0.0 }
 0x226   :  { %v1948_v25 = vpop.f32.mrb[43].mxu1 }
 0x227   :  { %v728_v11 = vadd.f32 %v1946_v4, %v2880_v42  ;;  %v1949_v52 = vadd.f32 %v1948_v25, %v1947_v48  ;;  %v912_v12 = vmax.f32 %v880_v18, 0.0 }
 0x229   :  { %v842_v19 = vmul.f32 %v728_v11, %v2793_v43  ;;  %v731_v57 = vadd.f32 %v1949_v52, %v2866_v31  ;;  %v942_v2 = vpack.c.bf16 %v912_v12, %v911_v56 }
 0x22b   :  { %v843_v3 = vmul.f32 %v731_v57, %v2791_v40  ;;  %v1950_v33 = vpop.f32.mrb[44].mxu1  ;;  %2246 = vmatmul.mubr.bf16.vlgmr.msra.gmra.mrb[0].mxu0 %v942_v2  ;;  %v881_v14 = vadd.f32 %v3180_v45, %v842_v19 }
 0x22c   :  { %v1951_v62 = vpop.f32.mrb[45].mxu1 }
 0x22d   :  { %v1952_v7 = vadd.f32 %v1951_v62, %v1950_v33  ;;  %v1953_v1 = vpop.f32.mrb[46].mxu1  ;;  %v882_v26 = vadd.f32 %v3180_v45, %v843_v3  ;;  %v913_v58 = vmax.f32 %v881_v14, 0.0 }
 0x22e   :  { %v1954_v42 = vpop.f32.mrb[47].mxu1 }
 0x22f   :  { %v736_v59 = vadd.f32 %v1952_v7, %v2897_v20  ;;  %v1955_v18 = vadd.f32 %v1954_v42, %v1953_v1  ;;  %v914_v0 = vmax.f32 %v882_v26, 0.0 }
 0x231   :  { %v844_v31 = vmul.f32 %v736_v59, %v2801_v51  ;;  %v739_v4 = vadd.f32 %v1955_v18, %v2890_v5  ;;  %v943_v48 = vpack.c.bf16 %v914_v0, %v913_v58 }
 0x233   :  { %v845_v25 = vmul.f32 %v739_v4, %v2799_v50  ;;  %v1956_v11 = vpop.f32.mrb[48].mxu1  ;;  %2249 = vmatprep.mubr.bf16.mxu0 %v943_v48  ;;  %v883_v52 = vadd.f32 %v3180_v45, %v844_v31 }
 0x234   :  { %v1957_v56 = vpop.f32.mrb[49].mxu1 }
 0x235   :  { %v1958_v12 = vadd.f32 %v1957_v56, %v1956_v11  ;;  %v1959_v19 = vpop.f32.mrb[50].mxu1  ;;  %v884_v57 = vadd.f32 %v3180_v45, %v845_v25  ;;  %v915_v33 = vmax.f32 %v883_v52, 0.0 }
 0x236   :  { %v1960_v20 = vpop.f32.mrb[51].mxu1 }
 0x237   :  { %v744_v2 = vadd.f32 %v1958_v12, %v2919_v16  ;;  %v1961_v3 = vadd.f32 %v1960_v20, %v1959_v19  ;;  %v916_v14 = vmax.f32 %v884_v57, 0.0 }
 0x239   :  { %v846_v5 = vmul.f32 %v744_v2, %v2823_v63  ;;  %v747_v62 = vadd.f32 %v1961_v3, %v2904_v27  ;;  %v944_v7 = vpack.c.bf16 %v916_v14, %v915_v33 }
 0x23b   :  { %v847_v1 = vmul.f32 %v747_v62, %v2817_v60  ;;  %v1962_v26 = vpop.f32.mrb[52].mxu1  ;;  %2250 = vmatmul.mubr.bf16.gmra.mrb[4].mxu0 %v944_v7  ;;  %v885_v42 = vadd.f32 %v3180_v45, %v846_v5 }
 0x23c   :  { %v1963_v59 = vpop.f32.mrb[53].mxu1 }
 0x23d   :  { %v1964_v18 = vadd.f32 %v1963_v59, %v1962_v26  ;;  %v1965_v58 = vpop.f32.mrb[54].mxu1  ;;  %v886_v0 = vadd.f32 %v3180_v45, %v847_v1  ;;  %v917_v48 = vmax.f32 %v885_v42, 0.0 }
 0x23e   :  { %v1966_v16 = vpop.f32.mrb[55].mxu1 }
 0x23f   :  { %v752_v31 = vadd.f32 %v1964_v18, %v2938_v46  ;;  %v1967_v4 = vadd.f32 %v1966_v16, %v1965_v58  ;;  %v918_v25 = vmax.f32 %v886_v0, 0.0 }
 0x241   :  { %v848_v27 = vmul.f32 %v752_v31, %v2856_v21  ;;  %v755_v11 = vadd.f32 %v1967_v4, %v2928_v22  ;;  %v945_v52 = vpack.c.bf16 %v918_v25, %v917_v48 }
 0x243   :  { %v849_v56 = vmul.f32 %v755_v11, %v2844_v13  ;;  %v1968_v12 = vpop.f32.mrb[56].mxu1  ;;  %2253 = vmatprep.mubr.bf16.mxu0 %v945_v52  ;;  %v887_v19 = vadd.f32 %v3180_v45, %v848_v27 }
 0x244   :  { %v1969_v57 = vpop.f32.mrb[57].mxu1 }
 0x245   :  { %v1970_v20 = vadd.f32 %v1969_v57, %v1968_v12  ;;  %v1971_v2 = vpop.f32.mrb[58].mxu1  ;;  %v888_v3 = vadd.f32 %v3180_v45, %v849_v56  ;;  %v919_v5 = vmax.f32 %v887_v19, 0.0 }
 0x246   :  { %v1972_v46 = vpop.f32.mrb[59].mxu1 }
 0x247   :  { %v760_v33 = vadd.f32 %v1970_v20, %v2959_v53  ;;  %v1973_v14 = vadd.f32 %v1972_v46, %v1971_v2  ;;  %v920_v62 = vmax.f32 %v888_v3, 0.0 }
 0x249   :  { %v850_v22 = vmul.f32 %v760_v33, %v2906_v32  ;;  %v763_v7 = vadd.f32 %v1973_v14, %v2946_v8  ;;  %v946_v1 = vpack.c.bf16 %v920_v62, %v919_v5 }
 0x24b   :  { %v851_v26 = vmul.f32 %v763_v7, %v2899_v24  ;;  %v1974_v42 = vpop.f32.mrb[60].mxu1  ;;  %2254 = vmatmul.mubr.bf16.gmra.mrb[8].mxu0 %v946_v1  ;;  %v889_v59 = vadd.f32 %v3180_v45, %v850_v22 }
 0x24c   :  { %v1975_v18 = vpop.f32.mrb[61].mxu1 }
 0x24d   :  { %v1976_v58 = vadd.f32 %v1975_v18, %v1974_v42  ;;  %v1977_v0 = vpop.f32.mrb[62].mxu1  ;;  %v890_v16 = vadd.f32 %v3180_v45, %v851_v26  ;;  %v921_v48 = vmax.f32 %v889_v59, 0.0 }
 0x24e   :  { %v1978_v53 = vpop.f32.mrb[63].mxu1 }
 0x24f   :  { %v768_v31 = vadd.f32 %v1976_v58, %v2986_v61  ;;  %v1979_v4 = vadd.f32 %v1978_v53, %v1977_v0  ;;  %v922_v25 = vmax.f32 %v890_v16, 0.0 }
 0x251   :  { %v852_v8 = vmul.f32 %v768_v31, %v2974_v28  ;;  %v771_v27 = vadd.f32 %v1979_v4, %v2970_v54  ;;  %v947_v11 = vpack.c.bf16 %v922_v25, %v921_v48 }
 0x253   :  { %v853_v52 = vmul.f32 %v771_v27, %v2961_v55  ;;  %v1980_v56 = vpop.f32.mrb[64].mxu1  ;;  %2257 = vmatprep.mubr.bf16.mxu0 %v947_v11  ;;  %v891_v12 = vadd.f32 %v3180_v45, %v852_v8 }
 0x254   :  { %v1981_v19 = vpop.f32.mrb[65].mxu1 }
 0x255   :  { %v1982_v57 = vadd.f32 %v1981_v19, %v1980_v56  ;;  %v1983_v20 = vpop.f32.mrb[66].mxu1  ;;  %v892_v2 = vadd.f32 %v3180_v45, %v853_v52  ;;  %v923_v33 = vmax.f32 %v891_v12, 0.0 }
 0x256   :  { %v1984_v61 = vpop.f32.mrb[67].mxu1 }
 0x257   :  { %v776_v3 = vadd.f32 %v1982_v57, %v2833_v6  ;;  %v1985_v46 = vadd.f32 %v1984_v61, %v1983_v20  ;;  %v924_v14 = vmax.f32 %v892_v2, 0.0 }
 0x259   :  { %v854_v54 = vmul.f32 %v776_v3, %v2773_v17  ;;  %v779_v5 = vadd.f32 %v1985_v46, %v2839_v9  ;;  %v948_v62 = vpack.c.bf16 %v924_v14, %v923_v33 }
 0x25b   :  { %v855_v22 = vmul.f32 %v779_v5, %v2777_v23  ;;  %v1986_v7 = vpop.f32.mrb[68].mxu1  ;;  %2258 = vmatmul.mubr.bf16.gmra.mrb[12].mxu0 %v948_v62  ;;  %v893_v1 = vadd.f32 %v3180_v45, %v854_v54 }
 0x25c   :  { %v1987_v26 = vpop.f32.mrb[69].mxu1 }
 0x25d   :  { %v1988_v42 = vadd.f32 %v1987_v26, %v1986_v7  ;;  %v1989_v59 = vpop.f32.mrb[70].mxu1  ;;  %v894_v18 = vadd.f32 %v3180_v45, %v855_v22  ;;  %v925_v16 = vmax.f32 %v893_v1, 0.0 }
 0x25e   :  { %v1990_v6 = vpop.f32.mrb[71].mxu1 }
 0x25f   :  { %v784_v58 = vadd.f32 %v1988_v42, %v2847_v15  ;;  %v1991_v0 = vadd.f32 %v1990_v6, %v1989_v59  ;;  %v926_v53 = vmax.f32 %v894_v18, 0.0 }
 0x261   :  { %v856_v9 = vmul.f32 %v784_v58, %v2781_v30  ;;  %v787_v31 = vadd.f32 %v1991_v0, %v2836_v10  ;;  %v949_v4 = vpack.c.bf16 %v926_v53, %v925_v16 }
 0x263   :  { %v857_v48 = vmul.f32 %v787_v31, %v2779_v29  ;;  %v1992_v25 = vpop.f32.mrb[72].mxu1  ;;  %2261 = vmatprep.mubr.bf16.mxu0 %v949_v4  ;;  %v895_v8 = vadd.f32 %v3180_v45, %v856_v9  ;;  %v3810_v31 = vld [vmem:[#allocation18_spill] sm:$0xff] }
 0x264   :  { %v1993_v27 = vpop.f32.mrb[73].mxu1 }
 0x265   :  { %v1994_v11 = vadd.f32 %v1993_v27, %v1992_v25  ;;  %v1995_v52 = vpop.f32.mrb[74].mxu1  ;;  %v896_v56 = vadd.f32 %v3180_v45, %v857_v48  ;;  %v927_v57 = vmax.f32 %v895_v8, 0.0  ;;  %v3811_v27 = vld [vmem:[#allocation13_spill] sm:$0xff] }
 0x266   :  { %v1996_v15 = vpop.f32.mrb[75].mxu1 }
 0x267   :  { %v792_v12 = vadd.f32 %v1994_v11, %v2871_v39  ;;  %v1997_v19 = vadd.f32 %v1996_v15, %v1995_v52  ;;  %v928_v20 = vmax.f32 %v896_v56, 0.0  ;;  %v3812_v11 = vld [vmem:[#allocation20_spill] sm:$0xff] }
 0x268   :  { %v3813_v15 = vld [vmem:[#allocation12_spill] sm:$0xff] }
 0x269   :  { %v858_v10 = vmul.f32 %v792_v12, %v2789_v37  ;;  %v795_v2 = vadd.f32 %v1997_v19, %v2877_v38  ;;  %v950_v61 = vpack.c.bf16 %v928_v20, %v927_v57 }
 0x26b   :  { %v859_v3 = vmul.f32 %v795_v2, %v2787_v36  ;;  %v1998_v46 = vpop.f32.mrb[76].mxu1  ;;  %2262 = vmatmul.mubr.bf16.gmra.mrb[16].mxu0 %v950_v61  ;;  %v897_v33 = vadd.f32 %v3180_v45, %v858_v10 }
 0x26c   :  { %v1999_v14 = vpop.f32.mrb[77].mxu1 }
 0x26d   :  { %v2000_v54 = vadd.f32 %v1999_v14, %v1998_v46  ;;  %v2001_v5 = vpop.f32.mrb[78].mxu1  ;;  %v898_v62 = vadd.f32 %v3180_v45, %v859_v3  ;;  %v929_v1 = vmax.f32 %v897_v33, 0.0  ;;  %v3814_v46 = vld [vmem:[#allocation21_spill] sm:$0xff] }
 0x26e   :  { %v2002_v39 = vpop.f32.mrb[79].mxu1 }
 0x26f   :  { %v800_v22 = vadd.f32 %v2000_v54, %v2885_v49  ;;  %v2003_v7 = vadd.f32 %v2002_v39, %v2001_v5  ;;  %v930_v26 = vmax.f32 %v898_v62, 0.0  ;;  %v3815_v62 = vld [vmem:[#allocation15_spill] sm:$0xff] }
 0x271   :  { %v860_v38 = vmul.f32 %v800_v22, %v2797_v47  ;;  %v803_v42 = vadd.f32 %v2003_v7, %v2874_v41  ;;  %v951_v59 = vpack.c.bf16 %v930_v26, %v929_v1  ;;  %v3816_v22 = vld [vmem:[#allocation19_spill] sm:$0xff]  ;;  %v3817_v26 = vld [vmem:[#allocation14_spill] sm:$0xff] }
 0x273   :  { %v861_v18 = vmul.f32 %v803_v42, %v2795_v44  ;;  %v2004_v6 = vpop.f32.mrb[80].mxu1  ;;  %2265 = vmatprep.mubr.bf16.mxu0 %v951_v59  ;;  %v899_v58 = vadd.f32 %v3180_v45, %v860_v38 }
 0x274   :  { %v2005_v0 = vpop.f32.mrb[81].mxu1 }
 0x275   :  { %v2006_v16 = vadd.f32 %v2005_v0, %v2004_v6  ;;  %v2007_v53 = vpop.f32.mrb[82].mxu1  ;;  %v900_v9 = vadd.f32 %v3180_v45, %v861_v18  ;;  %v931_v25 = vmax.f32 %v899_v58, 0.0 }
 0x276   :  { %v2008_v49 = vpop.f32.mrb[83].mxu1 }
 0x277   :  { %v808_v4 = vadd.f32 %v2006_v16, %v3810_v31  ;;  %v2009_v48 = vadd.f32 %v2008_v49, %v2007_v53  ;;  %v932_v8 = vmax.f32 %v900_v9, 0.0  ;;  %v3818_v53 = vld [vmem:[#allocation24_spill] sm:$0xff] }
 0x279   :  { %v862_v41 = vmul.f32 %v808_v4, %v3811_v27  ;;  %v811_v52 = vadd.f32 %v2009_v48, %v3812_v11  ;;  %v952_v56 = vpack.c.bf16 %v932_v8, %v931_v25  ;;  %v3819_v48 = vld [vmem:[#allocation17_spill] sm:$0xff]  ;;  %v3820_v8 = vld [vmem:[#allocation26_spill] sm:$0xff] }
 0x27b   :  { %v863_v12 = vmul.f32 %v811_v52, %v3813_v15  ;;  %v2010_v19 = vpop.f32.mrb[84].mxu1  ;;  %2266 = vmatmul.mubr.bf16.gmra.mrb[20].mxu0 %v952_v56  ;;  %v901_v57 = vadd.f32 %v3180_v45, %v862_v41  ;;  %v3821_v52 = vld [vmem:[#allocation16_spill] sm:$0xff] }
 0x27c   :  { %v2011_v20 = vpop.f32.mrb[85].mxu1 }
 0x27d   :  { %v2012_v10 = vadd.f32 %v2011_v20, %v2010_v19  ;;  %v2013_v2 = vpop.f32.mrb[86].mxu1  ;;  %v902_v61 = vadd.f32 %v3180_v45, %v863_v12  ;;  %v933_v54 = vmax.f32 %v901_v57, 0.0 }
 0x27e   :  { %v2014_v3 = vpop.f32.mrb[87].mxu1 }
 0x27f   :  { %v816_v33 = vadd.f32 %v2012_v10, %v3814_v46  ;;  %v2015_v14 = vadd.f32 %v2014_v3, %v2013_v2  ;;  %v934_v5 = vmax.f32 %v902_v61, 0.0  ;;  %v3822_v3 = vld [vmem:[#allocation27_spill] sm:$0xff] }
 0x281   :  { %v864_v39 = vmul.f32 %v816_v33, %v3815_v62  ;;  %v819_v7 = vadd.f32 %v2015_v14, %v3816_v22  ;;  %v953_v1 = vpack.c.bf16 %v934_v5, %v933_v54  ;;  %v3823_v5 = vld [vmem:[#allocation23_spill] sm:$0xff]  ;;  %v3824_v22 = vld [vmem:[#allocation25_spill] sm:$0xff] }
 0x283   :  { %v865_v38 = vmul.f32 %v819_v7, %v3817_v26  ;;  %v2016_v42 = vpop.f32.mrb[88].mxu1  ;;  %2269 = vmatprep.mubr.bf16.mxu0 %v953_v1  ;;  %v903_v59 = vadd.f32 %v3180_v45, %v864_v39 }
 0x284   :  { %v2017_v18 = vpop.f32.mrb[89].mxu1 }
 0x285   :  { %v2018_v6 = vadd.f32 %v2017_v18, %v2016_v42  ;;  %v2019_v58 = vpop.f32.mrb[90].mxu1  ;;  %v904_v0 = vadd.f32 %v3180_v45, %v865_v38  ;;  %v935_v31 = vmax.f32 %v903_v59, 0.0  ;;  %v3825_v38 = vld [vmem:[#allocation22_spill] sm:$0xff] }
 0x286   :  { %v2020_v16 = vpop.f32.mrb[91].mxu1 }
 0x287   :  { %v824_v9 = vadd.f32 %v2018_v6, %v3818_v53  ;;  %v2021_v49 = vadd.f32 %v2020_v16, %v2019_v58  ;;  %v936_v4 = vmax.f32 %v904_v0, 0.0  ;;  %v3826_v16 = vld [vmem:[#allocation6_spill] sm:$0xff] }
 0x288   :  { %v3827_v53 = vunpack.c.l.s8.bf16 %v3826_v16 }
 0x289   :  { %v866_v25 = vmul.f32 %v824_v9, %v3819_v48  ;;  %v827_v41 = vadd.f32 %v2021_v49, %v3820_v8  ;;  %v954_v11 = vpack.c.bf16 %v936_v4, %v935_v31 }
 0x28b   :  { %v867_v56 = vmul.f32 %v827_v41, %v3821_v52  ;;  %v2022_v12 = vpop.f32.mrb[92].mxu1  ;;  %2270 = vmatmul.mubr.bf16.gmra.mrb[24].mxu0 %v954_v11  ;;  %v905_v19 = vadd.f32 %v3180_v45, %v866_v25 }
 0x28c   :  { %v2023_v57 = vpop.f32.mrb[93].mxu1 }
 0x28d   :  { %v2024_v20 = vadd.f32 %v2023_v57, %v2022_v12  ;;  %v2025_v10 = vpop.f32.mrb[94].mxu1  ;;  %v906_v2 = vadd.f32 %v3180_v45, %v867_v56  ;;  %v937_v14 = vmax.f32 %v905_v19, 0.0 }
 0x28e   :  { %v2026_v61 = vpop.f32.mrb[95].mxu1 }
 0x28f   :  { %v832_v46 = vadd.f32 %v2024_v20, %v3822_v3  ;;  %v2027_v33 = vadd.f32 %v2026_v61, %v2025_v10  ;;  %v938_v54 = vmax.f32 %v906_v2, 0.0 }
 0x291   :  { %v868_v39 = vmul.f32 %v832_v46, %v3823_v5  ;;  %v835_v7 = vadd.f32 %v2027_v33, %v3824_v22  ;;  %v955_v1 = vpack.c.bf16 %v938_v54, %v937_v14  ;;  %v3828_v33 = vld [vmem:[#allocation8_spill] sm:$0xff] }
 0x293   :  { %v869_v42 = vmul.f32 %v835_v7, %v3825_v38  ;;  %2273 = vmatprep.mubr.bf16.mxu0 %v955_v1  ;;  %v907_v59 = vadd.f32 %v3180_v45, %v868_v39  ;;  %v3829_v1 = vld [vmem:[#allocation7_spill] sm:$0xff] }
 0x295   :  { %v908_v18 = vadd.f32 %v3180_v45, %v869_v42  ;;  %v939_v6 = vmax.f32 %v907_v59, 0.0 }
 0x297   :  { %v940_v58 = vmax.f32 %v908_v18, 0.0 }
 0x299   :  { %v956_v0 = vpack.c.bf16 %v940_v58, %v939_v6 }
 0x29b   :  { %2274 = vmatmul.mubr.bf16.gmra.mrb[28].mxu0 %v956_v0 }
 0x29c   :  { %1262 = vmatprep.mubr.bf16.mxu0 %v3827_v53 }
 0x2fe   :  { %v2247_v9 = vpop.f32.mrb[0].mxu0 }
 0x2ff   :  { %v1055_v49 = vpop.f32.mrb[1].mxu0  ;;  %v3317_v53 = vmul.f32 %v2247_v9, %v2785_v35 }
 0x300   :  { %v2248_v31 = vpop.f32.mrb[2].mxu0  ;;  %v3302_v42 = vmul.f32 %v1055_v49, %v3829_v1 }
 0x301   :  { %v1058_v4 = vpop.f32.mrb[3].mxu0  ;;  %v3310_v6 = vmul.f32 %v2248_v31, %v2783_v34 }
 0x302   :  { %v3290_v14 = vmul.f32 %v1058_v4, %v3828_v33 }
 0x303   :  { %v1215_v49 = vpack.c.bf16 %v3310_v6, %v3317_v53 }
 0x304   :  { %v1214_v58 = vpack.c.bf16 %v3290_v14, %v3302_v42 }
 0x30e   :  { %v2251_v25 = vpop.f32.mrb[4].mxu0 }
 0x30f   :  { %v1071_v8 = vpop.f32.mrb[5].mxu0 }
 0x310   :  { %v2252_v41 = vpop.f32.mrb[6].mxu0 }
 0x311   :  { %v1074_v11 = vpop.f32.mrb[7].mxu0 }
 0x31e   :  { %v3279_v56 = vpop.f32.mrb[8].mxu0 }
 0x31f   :  { %v1087_v12 = vpop.f32.mrb[9].mxu0 }
 0x320   :  { %v2256_v19 = vpop.f32.mrb[10].mxu0 }
 0x321   :  { %v1090_v45 = vpop.f32.mrb[11].mxu0 }
 0x32e   :  { %v3281_v57 = vpop.f32.mrb[12].mxu0 }
 0x32f   :  { %v3283_v20 = vpop.f32.mrb[13].mxu0 }
 0x330   :  { %v3285_v10 = vpop.f32.mrb[14].mxu0 }
 0x331   :  { %v3287_v2 = vpop.f32.mrb[15].mxu0 }
 0x33e   :  { %v2263_v61 = vpop.f32.mrb[16].mxu0 }
 0x33f   :  { %v1119_v3 = vpop.f32.mrb[17].mxu0  ;;  %v3305_v59 = vmul.f32 %v2263_v61, %v2781_v30 }
 0x340   :  { %v2264_v46 = vpop.f32.mrb[18].mxu0  ;;  %v3293_v39 = vmul.f32 %v1119_v3, %v2773_v17  ;;  %v3322_v3 = vmul.f32 %v1074_v11, %v2791_v40 }
 0x341   :  { %v1122_v54 = vpop.f32.mrb[19].mxu0  ;;  %v3296_v22 = vmul.f32 %v2264_v46, %v2779_v29 }
 0x342   :  { %v3299_v7 = vmul.f32 %v1122_v54, %v2777_v23 }
 0x343   :  { %v1223_v0 = vpack.c.bf16 %v3296_v22, %v3305_v59 }
 0x344   :  { %v1222_v18 = vpack.c.bf16 %v3299_v7, %v3293_v39 }
 0x346   :  { %2052 = vmatprep.subr.bf16.mxu0 %v1222_v18 }
 0x347   :  { %2053 = vmatpush3.bf16.msra.mxu0 %v1214_v58  ;;  %v3334_v58 = vmul.f32 %v1071_v8, %v2793_v43 }
 0x348   :  { %2054 = vmatprep.subr.bf16.mxu0 %v1223_v0 }
 0x34b   :  { %2055 = vmatpush3.bf16.msra.mxu0 %v1215_v49  ;;  %v3342_v49 = vmul.f32 %v2252_v41, %v2799_v50 }
 0x34e   :  { %v2267_v4 = vpop.f32.mrb[20].mxu0 }
 0x34f   :  { %v1135_v61 = vpop.f32.mrb[21].mxu0  ;;  %v3337_v0 = vmul.f32 %v2267_v4, %v2797_v47  ;;  %v3354_v47 = vmul.f32 %v1090_v45, %v2817_v60 }
 0x350   :  { %v2268_v31 = vpop.f32.mrb[22].mxu0  ;;  %v3325_v54 = vmul.f32 %v1135_v61, %v2789_v37  ;;  %v1216_v61 = vpack.c.bf16 %v3322_v3, %v3334_v58 }
 0x351   :  { %v1138_v46 = vpop.f32.mrb[23].mxu0  ;;  %v3328_v18 = vmul.f32 %v2268_v31, %v2795_v44 }
 0x352   :  { %v3331_v9 = vmul.f32 %v1138_v46, %v2787_v36  ;;  %v3349_v46 = vmul.f32 %v2251_v25, %v2801_v51 }
 0x353   :  { %v1225_v31 = vpack.c.bf16 %v3328_v18, %v3337_v0 }
 0x354   :  { %3830 = vst [vmem:[#allocation18_spill] sm:$0xff] %v3331_v9  ;;  %v1224_v11 = vpack.c.bf16 %v3331_v9, %v3325_v54  ;;  %v1217_v8 = vpack.c.bf16 %v3342_v49, %v3349_v46 }
 0x356   :  { %2056 = vmatprep.subr.bf16.mxu0 %v1224_v11 }
 0x357   :  { %2057 = vmatpush3.bf16.msra.mxu0 %v1216_v61  ;;  %v3366_v61 = vmul.f32 %v1087_v12, %v2823_v63 }
 0x358   :  { %2058 = vmatprep.subr.bf16.mxu0 %v1225_v31 }
 0x35b   :  { %2059 = vmatpush3.bf16.msra.mxu0 %v1217_v8  ;;  %v3374_v8 = vmul.f32 %v2256_v19, %v2844_v13 }
 0x35e   :  { %v2271_v4 = vpop.f32.mrb[24].mxu0 }
 0x35f   :  { %v1151_v44 = vpop.f32.mrb[25].mxu0  ;;  %v3369_v31 = vmul.f32 %v2271_v4, %v3815_v62  ;;  %v3388_v62 = vmul.f32 %v3287_v2, %v2899_v24 }
 0x360   :  { %v2272_v41 = vpop.f32.mrb[26].mxu0  ;;  %v3357_v9 = vmul.f32 %v1151_v44, %v3811_v27  ;;  %v1218_v44 = vpack.c.bf16 %v3354_v47, %v3366_v61 }
 0x361   :  { %v1154_v36 = vpop.f32.mrb[27].mxu0  ;;  %v3360_v11 = vmul.f32 %v2272_v41, %v3817_v26 }
 0x362   :  { %v3363_v25 = vmul.f32 %v1154_v36, %v3813_v15  ;;  %v3382_v36 = vmul.f32 %v3279_v56, %v2856_v21 }
 0x363   :  { %3831 = vst [vmem:[#allocation13_spill] sm:$0xff] %v3360_v11  ;;  %v1227_v41 = vpack.c.bf16 %v3360_v11, %v3369_v31 }
 0x364   :  { %v1226_v45 = vpack.c.bf16 %v3363_v25, %v3357_v9  ;;  %v1219_v12 = vpack.c.bf16 %v3374_v8, %v3382_v36 }
 0x366   :  { %2060 = vmatprep.subr.bf16.mxu0 %v1226_v45 }
 0x367   :  { %2061 = vmatpush3.bf16.msra.mxu0 %v1218_v44 }
 0x368   :  { %2062 = vmatprep.subr.bf16.mxu0 %v1227_v41  ;;  %v3401_v41 = vmul.f32 %v3283_v20, %v2906_v32  ;;  %v3418_v20 = vmul.f32 %v3281_v57, %v2974_v28  ;;  %v3842_v57 = vld [vmem:[#allocation30_spill] sm:$0xff] }
 0x36b   :  { %2063 = vmatpush3.bf16.msra.mxu0 %v1219_v12 }
 0x36e   :  { %v2275_v4 = vpop.f32.mrb[28].mxu0 }
 0x36f   :  { %v1167_v19 = vpop.f32.mrb[29].mxu0  ;;  %v3404_v12 = vmul.f32 %v2275_v4, %v3823_v5  ;;  %v3838_v5 = vunpack.c.h.s8.bf16 %v3826_v16  ;;  %v3848_v16 = vld [vmem:[#allocation32_spill] sm:$0xff] }
 0x370   :  { %v2276_v26 = vpop.f32.mrb[30].mxu0  ;;  %v3391_v45 = vmul.f32 %v1167_v19, %v3819_v48  ;;  %v3410_v19 = vmul.f32 %v3285_v10, %v2961_v55 }
 0x371   :  { %v1170_v15 = vpop.f32.mrb[31].mxu0  ;;  %v3394_v56 = vmul.f32 %v2276_v26, %v3825_v38  ;;  %3835 = vst [vmem:[#allocation24_spill] sm:$0xff] %v3404_v12  ;;  %v1220_v26 = vpack.c.bf16 %v3388_v62, %v3401_v41  ;;  %v3836_v38 = vld [vmem:[#allocation28_spill] sm:$0xff] }
 0x372   :  { %3832 = vst [vmem:[#allocation20_spill] sm:$0xff] %v3391_v45  ;;  %v3397_v44 = vmul.f32 %v1170_v15, %v3821_v52  ;;  %v1221_v4 = vpack.c.bf16 %v3410_v19, %v3418_v20  ;;  %v3837_v10 = vunpack.c.l.s8.bf16 %v3836_v38  ;;  %v3839_v52 = vunpack.c.h.s8.bf16 %v3836_v38 }
 0x373   :  { %3833 = vst [vmem:[#allocation21_spill] sm:$0xff] %v3394_v56  ;;  %v1229_v15 = vpack.c.bf16 %v3394_v56, %v3404_v12  ;;  %v3843_v12 = vunpack.c.l.s8.bf16 %v3842_v57  ;;  %v3851_v38 = vunpack.c.h.s8.bf16 %v3848_v16 }
 0x374   :  { %3834 = vst [vmem:[#allocation19_spill] sm:$0xff] %v3397_v44  ;;  %v1228_v2 = vpack.c.bf16 %v3397_v44, %v3391_v45 }
 0x376   :  { %2064 = vmatprep.subr.bf16.mxu0 %v1228_v2  ;;  %v3840_v2 = vld [vmem:[#allocation29_spill] sm:$0xff] }
 0x377   :  { %2065 = vmatpush3.bf16.msra.mxu0 %v1220_v26  ;;  %v3841_v56 = vunpack.c.l.s8.bf16 %v3840_v2  ;;  %v3844_v26 = vunpack.c.h.s8.bf16 %v3840_v2  ;;  %v3854_v2 = vld [vmem:[#allocation34_spill] sm:$0xff] }
 0x378   :  { %2066 = vmatprep.subr.bf16.mxu0 %v1229_v15  ;;  %v3845_v15 = vunpack.c.h.s8.bf16 %v3842_v57 }
 0x37b   :  { %2067 = vmatpush3.bf16.msra.mxu0 %v1221_v4  ;;  %v3846_v4 = vld [vmem:[#allocation31_spill] sm:$0xff] }
 0x37e   :  { %1263 = vmatmul.mubr.bf16.vlgmr.msra.gmra.mrb[32].mxu0 %v3837_v10  ;;  %v3847_v10 = vunpack.c.l.s8.bf16 %v3846_v4 }
 0x37f   :  { %1270 = vmatprep.mubr.bf16.mxu0 %v3838_v5  ;;  %v3849_v5 = vunpack.c.l.s8.bf16 %v3848_v16 }
 0x386   :  { %1271 = vmatmul.mubr.bf16.gmra.mrb[36].mxu0 %v3839_v52  ;;  %v3850_v52 = vunpack.c.h.s8.bf16 %v3846_v4  ;;  %v3860_v4 = vld [vmem:[#allocation36_spill] sm:$0xff] }
 0x387   :  { %1278 = vmatprep.mubr.bf16.mxu0 %v3841_v56  ;;  %v3852_v56 = vld [vmem:[#allocation33_spill] sm:$0xff] }
 0x388   :  { %v3856_v57 = vunpack.c.h.s8.bf16 %v3852_v56 }
 0x38e   :  { %1279 = vmatmul.mubr.bf16.gmra.mrb[40].mxu0 %v3843_v12  ;;  %v3853_v12 = vunpack.c.l.s8.bf16 %v3852_v56  ;;  %v3866_v56 = vld [vmem:[#allocation38_spill] sm:$0xff] }
 0x38f   :  { %1286 = vmatprep.mubr.bf16.mxu0 %v3844_v26  ;;  %v3855_v26 = vunpack.c.l.s8.bf16 %v3854_v2 }
 0x396   :  { %1287 = vmatmul.mubr.bf16.gmra.mrb[44].mxu0 %v3845_v15  ;;  %v3857_v15 = vunpack.c.h.s8.bf16 %v3854_v2 }
 0x397   :  { %1294 = vmatprep.mubr.bf16.mxu0 %v3847_v10  ;;  %v3858_v10 = vld [vmem:[#allocation35_spill] sm:$0xff] }
 0x398   :  { %v3862_v16 = vunpack.c.h.s8.bf16 %v3858_v10 }
 0x39e   :  { %1295 = vmatmul.mubr.bf16.gmra.mrb[48].mxu0 %v3849_v5  ;;  %v3859_v5 = vunpack.c.l.s8.bf16 %v3858_v10  ;;  %v3872_v10 = vld [vmem:[#allocation40_spill] sm:$0xff] }
 0x39f   :  { %1302 = vmatprep.mubr.bf16.mxu0 %v3850_v52  ;;  %v3861_v52 = vunpack.c.l.s8.bf16 %v3860_v4 }
 0x3a6   :  { %1303 = vmatmul.mubr.bf16.gmra.mrb[52].mxu0 %v3851_v38  ;;  %v3863_v38 = vunpack.c.h.s8.bf16 %v3860_v4 }
 0x3a7   :  { %1310 = vmatprep.mubr.bf16.mxu0 %v3853_v12  ;;  %v3864_v12 = vld [vmem:[#allocation37_spill] sm:$0xff] }
 0x3a8   :  { %v3868_v2 = vunpack.c.h.s8.bf16 %v3864_v12 }
 0x3ae   :  { %1311 = vmatmul.mubr.bf16.gmra.mrb[56].mxu0 %v3855_v26  ;;  %v3865_v26 = vunpack.c.l.s8.bf16 %v3864_v12  ;;  %v3878_v12 = vld [vmem:[#allocation42_spill] sm:$0xff] }
 0x3af   :  { %1318 = vmatprep.mubr.bf16.mxu0 %v3856_v57  ;;  %v3867_v57 = vunpack.c.l.s8.bf16 %v3866_v56 }
 0x3b6   :  { %1319 = vmatmul.mubr.bf16.gmra.mrb[60].mxu0 %v3857_v15  ;;  %v3869_v15 = vunpack.c.h.s8.bf16 %v3866_v56 }
 0x3b7   :  { %1326 = vmatprep.mubr.bf16.mxu0 %v3859_v5  ;;  %v3870_v5 = vld [vmem:[#allocation39_spill] sm:$0xff] }
 0x3b8   :  { %v3874_v4 = vunpack.c.h.s8.bf16 %v3870_v5 }
 0x3be   :  { %1327 = vmatmul.mubr.bf16.gmra.mrb[64].mxu0 %v3861_v52  ;;  %v3871_v52 = vunpack.c.l.s8.bf16 %v3870_v5  ;;  %v1755_v5 = vld [vmem:[%s3660_s7] sm:$0xff] }
 0x3bf   :  { %1334 = vmatprep.mubr.bf16.mxu0 %v3862_v16  ;;  %v3873_v16 = vunpack.c.l.s8.bf16 %v3872_v10 }
 0x3c6   :  { %1335 = vmatmul.mubr.bf16.gmra.mrb[68].mxu0 %v3863_v38  ;;  %v3875_v38 = vunpack.c.h.s8.bf16 %v3872_v10  ;;  %v3769_v10 = vmov 0.0|0.0  }
 0x3c7   :  { %1342 = vmatprep.mubr.bf16.mxu0 %v3865_v26  ;;  %v3876_v26 = vld [vmem:[#allocation41_spill] sm:$0xff]  ;;  %2312 = vmatprep.subr.bf16.mxu1 %v3769_v10 }
 0x3c8   :  { %v3880_v56 = vunpack.c.h.s8.bf16 %v3876_v26 }
 0x3ce   :  { %1343 = vmatmul.mubr.bf16.gmra.mrb[72].mxu0 %v3867_v57  ;;  %v3877_v57 = vunpack.c.l.s8.bf16 %v3876_v26 }
 0x3cf   :  { %1350 = vmatprep.mubr.bf16.mxu0 %v3868_v2  ;;  %v3879_v2 = vunpack.c.l.s8.bf16 %v3878_v12 }
 0x3d6   :  { %1351 = vmatmul.mubr.bf16.gmra.mrb[76].mxu0 %v3869_v15  ;;  %v3881_v15 = vunpack.c.h.s8.bf16 %v3878_v12  ;;  %v1760_v12 = vld [vmem:[%s3660_s7 + $0x28] sm:$0xff] }
 0x3d7   :  { %1358 = vmatprep.mubr.bf16.mxu0 %v3871_v52  ;;  %v1756_v52 = vld [vmem:[%s3660_s7 + $0x8] sm:$0xff] }
 0x3de   :  { %1359 = vmatmul.mubr.bf16.gmra.mrb[80].mxu0 %v3873_v16  ;;  %v2313_v16 = vpack.c.bf16 %v1756_v52, %v1755_v5  ;;  %v1763_v52 = vld [vmem:[%s3660_s7 + $0x40] sm:$0xff] }
 0x3df   :  { %1366 = vmatprep.mubr.bf16.mxu0 %v3874_v4  ;;  %v1757_v4 = vld [vmem:[%s3660_s7 + $0x10] sm:$0xff] }
 0x3e0   :  { %2314 = vmatpush3.bf16.msra.mxu1 %v2313_v16  ;;  %v1764_v16 = vld [vmem:[%s3660_s7 + $0x48] sm:$0xff] }
 0x3e1   :  { %2315 = vmatprep.subr.bf16.mxu1 %v3769_v10 }
 0x3e6   :  { %1367 = vmatmul.mubr.bf16.gmra.mrb[84].mxu0 %v3875_v38  ;;  %v1758_v38 = vld [vmem:[%s3660_s7 + $0x18] sm:$0xff] }
 0x3e7   :  { %1374 = vmatprep.mubr.bf16.mxu0 %v3877_v57  ;;  %v2316_v26 = vpack.c.bf16 %v1758_v38, %v1757_v4  ;;  %v1759_v57 = vld [vmem:[%s3660_s7 + $0x20] sm:$0xff]  ;;  %v2325_v38 = vpack.c.bf16 %v1764_v16, %v1763_v52 }
 0x3e9   :  { %2317 = vmatpush3.bf16.msra.mxu1 %v2316_v26 }
 0x3ea   :  { %2318 = vmatprep.subr.bf16.mxu1 %v3769_v10 }
 0x3ee   :  { %1375 = vmatmul.mubr.bf16.gmra.mrb[88].mxu0 %v3879_v2  ;;  %v2319_v2 = vpack.c.bf16 %v1760_v12, %v1759_v57 }
 0x3ef   :  { %1382 = vmatprep.mubr.bf16.mxu0 %v3880_v56  ;;  %v1761_v56 = vld [vmem:[%s3660_s7 + $0x30] sm:$0xff] }
 0x3f0   :  { %2320 = vmatpush3.bf16.msra.mxu1 %v2319_v2 }
 0x3f1   :  { %2321 = vmatprep.subr.bf16.mxu1 %v3769_v10 }
 0x3f6   :  { %1383 = vmatmul.mubr.bf16.gmra.mrb[92].mxu0 %v3881_v15  ;;  %v1762_v15 = vld [vmem:[%s3660_s7 + $0x38] sm:$0xff] }
 0x3f7   :  { %v2322_v5 = vpack.c.bf16 %v1762_v15, %v1761_v56 }
 0x3f9   :  { %2323 = vmatpush3.bf16.msra.mxu1 %v2322_v5  ;;  %v3524_v5 = vld [vmem:[%s3659_s6] ss:$0 sm:$0xff] }
 0x3fa   :  { %2324 = vmatprep.subr.bf16.mxu1 %v3769_v10 }
 0x3fd   :  { %2326 = vmatpush3.bf16.msra.mxu1 %v2325_v38 }
 0x3fe   :  { %2327 = vmatprep.subr.bf16.mxu1 %v3769_v10 }
 0x451   :  { %v2068_v4 = vpop.f32.mrb[32].mxu0 }
 0x452   :  { %v2069_v26 = vpop.f32.mrb[33].mxu0 }
 0x453   :  { %v2070_v57 = vadd.f32 %v2069_v26, %v2068_v4  ;;  %v2071_v12 = vpop.f32.mrb[34].mxu0  ;;  %v1560_v26 = vpop.permute.xlu0 %1559 }
 0x454   :  { %v2072_v2 = vpop.f32.mrb[35].mxu0  ;;  %vm1654_vm0 = vcmp.eq.s32.totalorder %v1560_v26, 1 }
 0x455   :  { %v1265_v56 = vadd.f32 %v2070_v57, %v3302_v42  ;;  %v2073_v15 = vadd.f32 %v2072_v2, %v2071_v12  ;;  %v1563_v2 = vpop.permute.xlu1 %1562 }
 0x456   :  { %vm1655_vm1 = vcmp.eq.s32.totalorder %v1563_v2, 1 }
 0x457   :  { %v1391_v44 = vmul.f32 %v1265_v56, %v3829_v1  ;;  %v1268_v48 = vadd.f32 %v2073_v15, %v3290_v14  ;;  %v1566_v2 = vpop.permute.xlu0 %1565 }
 0x458   :  { %vm1656_vm3 = vcmp.eq.s32.totalorder %v1566_v2, 1 }
 0x459   :  { %v1430_v52 = vadd.f32 %v3524_v5, %v1391_v44  ;;  %v1392_v16 = vmul.f32 %v1268_v48, %v3828_v33  ;;  %v2074_v4 = vpop.f32.mrb[36].mxu0  ;;  %v1765_v48 = vld [vmem:[%s3660_s7 + $0x50] sm:$0xff]  ;;  %v1766_v33 = vld [vmem:[%s3660_s7 + $0x58] sm:$0xff]  ;;  %v1767_v44 = vld [vmem:[%s3660_s7 + $0x60] sm:$0xff] }
 0x45a   :  { %v2075_v38 = vpop.f32.mrb[37].mxu0 }
 0x45b   :  { %v1462_v10 = vmax.f32 %v1430_v52, 0.0  ;;  %v1431_v42 = vadd.f32 %v3524_v5, %v1392_v16  ;;  %v2076_v57 = vadd.f32 %v2075_v38, %v2074_v4  ;;  %v2077_v12 = vpop.f32.mrb[38].mxu0 }
 0x45c   :  { %v2078_v45 = vpop.f32.mrb[39].mxu0 }
 0x45d   :  { %v1463_v11 = vmax.f32 %v1431_v42, 0.0  ;;  %v1273_v1 = vadd.f32 %v2076_v57, %v3317_v53  ;;  %v2079_v14 = vadd.f32 %v2078_v45, %v2077_v12  ;;  %v1686_v56 = vsel %vm1654_vm0, %v1462_v10, 0.0  ;;  %v1768_v45 = vld [vmem:[%s3660_s7 + $0x68] sm:$0xff] }
 0x45e   :  { %v2328_v53 = vpack.c.bf16 %v1766_v33, %v1765_v48  ;;  %v2402_v10 = vmov 0.0   ;;  %v3882_v12 = vmov 0.0|0.0  }
 0x45f   :  { %v1687_v15 = vsel %vm1655_vm1, %v1463_v11, 0.0  ;;  %v1393_v52 = vmul.f32 %v1273_v1, %v2785_v35  ;;  %v1276_v16 = vadd.f32 %v2079_v14, %v3310_v6  ;;  %2309 = vmatprep.mubr.msk.f32.mxu1 %vm2401_vm2, %v2402_v10  ;;  %v2331_v11 = vpack.c.bf16 %v1768_v45, %v1767_v44  ;;  %v1769_v35 = vld [vmem:[%s3660_s7 + $0x70] sm:$0xff]  ;;  %v1770_v6 = vld [vmem:[%s3660_s7 + $0x78] sm:$0xff]  ;;  %v1569_v44 = vpop.permute.xlu1 %1568  ;;  %s2403_s7 = smov [#allocation3]  }
 0x460   :  { %v1718_v4 = vadd.f32 %v1687_v15, %v1686_v56  ;;  %2329 = vmatpush3.bf16.msra.mxu1 %v2328_v53  ;;  %v2334_v33 = vpack.c.bf16 %v1770_v6, %v1769_v35  ;;  %vm1657_vm4 = vcmp.eq.s32.totalorder %v1569_v44, 1  ;;  %s1850_s10 = sshll.u32 %s2403_s7, 4  ;;  %s1851_s10 = int_to_ptr.vmem [resolvable:$true] %s1850_s10 }
 0x461   :  { %v1432_v38 = vadd.f32 %v3524_v5, %v1393_v52  ;;  %v1394_v26 = vmul.f32 %v1276_v16, %v2783_v34  ;;  %v2080_v42 = vpop.f32.mrb[40].mxu0  ;;  %2330 = vmatprep.subr.bf16.mxu1 %v3882_v12  ;;  %s2375_s3 = scalar_lea.vmem %s1851_s10, 16  ;;  %s2379_s11 = scalar_lea.vmem %s1851_s10, 32 }
 0x462   :  { %v2081_v57 = vpop.f32.mrb[41].mxu0  ;;  %p2376_p0 = scmp.ne.s32.totalorder %s1851_s10, %s2375_s3  ;;  %p2380_p1 = scmp.lt.s32.totalorder %s1851_s10, %s1851_s10 }
 0x463   :  { %v1464_v1 = vmax.f32 %v1432_v38, 0.0  ;;  %v1433_v14 = vadd.f32 %v3524_v5, %v1394_v26  ;;  %v2082_v56 = vadd.f32 %v2081_v57, %v2080_v42  ;;  %v2083_v34 = vpop.f32.mrb[42].mxu0  ;;  %p2381_p2 = scmp.lt.s32.totalorder %s2379_s11, %s2375_s3 }
 0x464   :  { %v2084_v48 = vpop.f32.mrb[43].mxu0  ;;  %2332 = vmatpush3.bf16.msra.mxu1 %v2331_v11 }
 0x465   :  { %v1688_v15 = vsel %vm1656_vm3, %v1464_v1, 0.0  ;;  %v1465_v52 = vmax.f32 %v1433_v14, 0.0  ;;  %v1281_v16 = vadd.f32 %v2082_v56, %v3334_v58  ;;  %v2085_v53 = vadd.f32 %v2084_v48, %v2083_v34  ;;  %2333 = vmatprep.subr.bf16.mxu1 %v3882_v12  ;;  %v1572_v58 = vpop.permute.xlu0 %1571  ;;  %v1575_v56 = vpop.permute.xlu1 %1574  ;;  %p2382_p3 = por %p2381_p2, %p2380_p1 }
 0x466   :  { %v1719_v45 = vadd.f32 %v1718_v4, %v1688_v15  ;;  %vm1658_vm5 = vcmp.eq.s32.totalorder %v1572_v58, 1  ;;  %vm1659_vm6 = vcmp.eq.s32.totalorder %v1575_v56, 1 }
 0x467   :  { %v1689_v10 = vsel %vm1657_vm4, %v1465_v52, 0.0  ;;  %v1395_v38 = vmul.f32 %v1281_v16, %v2793_v43  ;;  %v1284_v26 = vadd.f32 %v2085_v53, %v3322_v3  ;;  %p2383_p4 = pnand %p2382_p3, %p2376_p0 }
 0x468   :  { %v1720_v42 = vadd.f32 %v1719_v45, %v1689_v10  ;;  %2335 = vmatpush3.bf16.msra.mxu1 %v2334_v33 }
 0x469   :  { %v1434_v57 = vadd.f32 %v3524_v5, %v1395_v38  ;;  %v1396_v35 = vmul.f32 %v1284_v26, %v2791_v40  ;;  %v2086_v6 = vpop.f32.mrb[44].mxu0  ;;  %v1578_v38 = vpop.permute.xlu0 %1577 }
 0x46a   :  { %v2087_v2 = vpop.f32.mrb[45].mxu0  ;;  %vm1660_vm7 = vcmp.eq.s32.totalorder %v1578_v38, 1 }
 0x46b   :  { %v1466_v1 = vmax.f32 %v1434_v57, 0.0  ;;  %v1435_v11 = vadd.f32 %v3524_v5, %v1396_v35  ;;  %v2088_v4 = vadd.f32 %v2087_v2, %v2086_v6  ;;  %v2089_v14 = vpop.f32.mrb[46].mxu0  ;;  %v1581_v6 = vpop.permute.xlu1 %1580 }
 0x46c   :  { %v2090_v12 = vpop.f32.mrb[47].mxu0  ;;  %vm1661_vm8 = vcmp.eq.s32.totalorder %v1581_v6, 1 }
 0x46d   :  { %v1690_v43 = vsel %vm1658_vm5, %v1466_v1, 0.0  ;;  %v1467_v34 = vmax.f32 %v1435_v11, 0.0  ;;  %v1289_v3 = vadd.f32 %v2088_v4, %v3349_v46  ;;  %v2091_v48 = vadd.f32 %v2090_v12, %v2089_v14 }
 0x46e   :  { %v1721_v44 = vadd.f32 %v1720_v42, %v1690_v43 }
 0x46f   :  { %v1691_v40 = vsel %vm1659_vm6, %v1467_v34, 0.0  ;;  %v1397_v33 = vmul.f32 %v1289_v3, %v2801_v51  ;;  %v1292_v15 = vadd.f32 %v2091_v48, %v3342_v49  ;;  %v1584_v3 = vpop.permute.xlu0 %1583 }
 0x470   :  { %v1722_v52 = vadd.f32 %v1721_v44, %v1691_v40  ;;  %vm1662_vm9 = vcmp.eq.s32.totalorder %v1584_v3, 1 }
 0x471   :  { %v1436_v16 = vadd.f32 %v3524_v5, %v1397_v33  ;;  %v1398_v53 = vmul.f32 %v1292_v15, %v2799_v50  ;;  %v2092_v45 = vpop.f32.mrb[48].mxu0  ;;  %v1587_v15 = vpop.permute.xlu1 %1586 }
 0x472   :  { %v2093_v10 = vpop.f32.mrb[49].mxu0  ;;  %vm1663_vm10 = vcmp.eq.s32.totalorder %v1587_v15, 1 }
 0x473   :  { %v1468_v26 = vmax.f32 %v1436_v16, 0.0  ;;  %v1437_v57 = vadd.f32 %v3524_v5, %v1398_v53  ;;  %v2094_v46 = vadd.f32 %v2093_v10, %v2092_v45  ;;  %v2095_v35 = vpop.f32.mrb[50].mxu0 }
 0x474   :  { %v2096_v42 = vpop.f32.mrb[51].mxu0 }
 0x475   :  { %v1692_v2 = vsel %vm1660_vm7, %v1468_v26, 0.0  ;;  %v1469_v51 = vmax.f32 %v1437_v57, 0.0  ;;  %v1297_v49 = vadd.f32 %v2094_v46, %v3366_v61  ;;  %v2097_v58 = vadd.f32 %v2096_v42, %v2095_v35  ;;  %v1590_v42 = vpop.permute.xlu0 %1589 }
 0x476   :  { %v1723_v1 = vadd.f32 %v1722_v52, %v1692_v2  ;;  %vm1664_vm11 = vcmp.eq.s32.totalorder %v1590_v42, 1 }
 0x477   :  { %v1693_v11 = vsel %vm1661_vm8, %v1469_v51, 0.0  ;;  %v1399_v50 = vmul.f32 %v1297_v49, %v2823_v63  ;;  %v1300_v4 = vadd.f32 %v2097_v58, %v3354_v47  ;;  %v1593_v58 = vpop.permute.xlu1 %1592 }
 0x478   :  { %v1724_v14 = vadd.f32 %v1723_v1, %v1693_v11  ;;  %vm1665_vm12 = vcmp.eq.s32.totalorder %v1593_v58, 1 }
 0x479   :  { %v1438_v12 = vadd.f32 %v3524_v5, %v1399_v50  ;;  %v1400_v56 = vmul.f32 %v1300_v4, %v2817_v60  ;;  %v2098_v43 = vpop.f32.mrb[52].mxu0 }
 0x47a   :  { %v2099_v34 = vpop.f32.mrb[53].mxu0 }
 0x47b   :  { %v1470_v48 = vmax.f32 %v1438_v12, 0.0  ;;  %v1439_v44 = vadd.f32 %v3524_v5, %v1400_v56  ;;  %v2100_v61 = vadd.f32 %v2099_v34, %v2098_v43  ;;  %v2101_v40 = vpop.f32.mrb[54].mxu0  ;;  %v1599_v15 = vpop.permute.xlu1 %1598 }
 0x47c   :  { %v2102_v33 = vpop.f32.mrb[55].mxu0  ;;  %vm1667_vm14 = vcmp.eq.s32.totalorder %v1599_v15, 1 }
 0x47d   :  { %v1694_v52 = vsel %vm1662_vm9, %v1470_v48, 0.0  ;;  %v1471_v63 = vmax.f32 %v1439_v44, 0.0  ;;  %v1305_v47 = vadd.f32 %v2100_v61, %v3382_v36  ;;  %v2103_v16 = vadd.f32 %v2102_v33, %v2101_v40  ;;  %v1596_v48 = vpop.permute.xlu0 %1595 }
 0x47e   :  { %v1725_v53 = vadd.f32 %v1724_v14, %v1694_v52  ;;  %vm1666_vm13 = vcmp.eq.s32.totalorder %v1596_v48, 1 }
 0x47f   :  { %v1695_v45 = vsel %vm1663_vm10, %v1471_v63, 0.0  ;;  %v1401_v60 = vmul.f32 %v1305_v47, %v2856_v21  ;;  %v1308_v10 = vadd.f32 %v2103_v16, %v3374_v8 }
 0x480   :  { %v1726_v38 = vadd.f32 %v1725_v53, %v1695_v45 }
 0x481   :  { %v1440_v26 = vadd.f32 %v3524_v5, %v1401_v60  ;;  %v1402_v57 = vmul.f32 %v1308_v10, %v2844_v13  ;;  %v2104_v46 = vpop.f32.mrb[56].mxu0 }
 0x482   :  { %v2105_v35 = vpop.f32.mrb[57].mxu0 }
 0x483   :  { %v1472_v6 = vmax.f32 %v1440_v26, 0.0  ;;  %v1441_v2 = vadd.f32 %v3524_v5, %v1402_v57  ;;  %v2106_v36 = vadd.f32 %v2105_v35, %v2104_v46  ;;  %v2107_v51 = vpop.f32.mrb[58].mxu0  ;;  %v1602_v57 = vpop.permute.xlu0 %1601 }
 0x484   :  { %v2108_v49 = vpop.f32.mrb[59].mxu0  ;;  %vm1668_vm15 = vcmp.eq.s32.totalorder %v1602_v57, 1 }
 0x485   :  { %v1696_v1 = vsel %vm1664_vm11, %v1472_v6, 0.0  ;;  %v1473_v21 = vmax.f32 %v1441_v2, 0.0  ;;  %v1313_v8 = vadd.f32 %v2106_v36, %v3401_v41  ;;  %v2109_v11 = vadd.f32 %v2108_v49, %v2107_v51  ;;  %v1605_v2 = vpop.permute.xlu1 %1604 }
 0x486   :  { %v1727_v50 = vadd.f32 %v1726_v38, %v1696_v1  ;;  %vm1669_vm0 = vcmp.eq.s32.totalorder %v1605_v2, 1 }
 0x487   :  { %v1697_v4 = vsel %vm1665_vm12, %v1473_v21, 0.0  ;;  %v1403_v13 = vmul.f32 %v1313_v8, %v2906_v32  ;;  %v1316_v14 = vadd.f32 %v2109_v11, %v3388_v62 }
 0x488   :  { %v1728_v12 = vadd.f32 %v1727_v50, %v1697_v4 }
 0x489   :  { %v1442_v56 = vadd.f32 %v3524_v5, %v1403_v13  ;;  %v1404_v43 = vmul.f32 %v1316_v14, %v2899_v24  ;;  %v2110_v34 = vpop.f32.mrb[60].mxu0  ;;  %v1608_v13 = vpop.permute.xlu0 %1607 }
 0x48a   :  { %v2111_v3 = vpop.f32.mrb[61].mxu0  ;;  %vm1670_vm1 = vcmp.eq.s32.totalorder %v1608_v13, 1 }
 0x48b   :  { %v1474_v44 = vmax.f32 %v1442_v56, 0.0  ;;  %v1443_v61 = vadd.f32 %v3524_v5, %v1404_v43  ;;  %v2112_v41 = vadd.f32 %v2111_v3, %v2110_v34  ;;  %v2113_v40 = vpop.f32.mrb[62].mxu0  ;;  %v1611_v34 = vpop.permute.xlu1 %1610 }
 0x48c   :  { %v2114_v33 = vpop.f32.mrb[63].mxu0  ;;  %vm1671_vm2 = vcmp.eq.s32.totalorder %v1611_v34, 1 }
 0x48d   :  { %v1698_v52 = vsel %vm1666_vm13, %v1474_v44, 0.0  ;;  %v1475_v32 = vmax.f32 %v1443_v61, 0.0  ;;  %v1321_v62 = vadd.f32 %v2112_v41, %v3418_v20  ;;  %v2115_v63 = vadd.f32 %v2114_v33, %v2113_v40 }
 0x48e   :  { %v1729_v47 = vadd.f32 %v1728_v12, %v1698_v52 }
 0x48f   :  { %v1699_v16 = vsel %vm1667_vm14, %v1475_v32, 0.0  ;;  %v1405_v24 = vmul.f32 %v1321_v62, %v2974_v28  ;;  %v1324_v53 = vadd.f32 %v2115_v63, %v3410_v19  ;;  %v1614_v62 = vpop.permute.xlu0 %1613 }
 0x490   :  { %v1730_v45 = vadd.f32 %v1729_v47, %v1699_v16  ;;  %vm1672_vm3 = vcmp.eq.s32.totalorder %v1614_v62, 1 }
 0x491   :  { %v1444_v60 = vadd.f32 %v3524_v5, %v1405_v24  ;;  %v1406_v10 = vmul.f32 %v1324_v53, %v2961_v55  ;;  %v2116_v38 = vpop.f32.mrb[64].mxu0  ;;  %v1617_v53 = vpop.permute.xlu1 %1616 }
 0x492   :  { %v2117_v26 = vpop.f32.mrb[65].mxu0  ;;  %vm1673_vm4 = vcmp.eq.s32.totalorder %v1617_v53, 1 }
 0x493   :  { %v1476_v46 = vmax.f32 %v1444_v60, 0.0  ;;  %v1445_v35 = vadd.f32 %v3524_v5, %v1406_v10  ;;  %v2118_v20 = vadd.f32 %v2117_v26, %v2116_v38  ;;  %v2119_v42 = vpop.f32.mrb[66].mxu0  ;;  %v3883_v26 = vld [vmem:[#allocation18_spill] sm:$0xff] }
 0x494   :  { %v2120_v6 = vpop.f32.mrb[67].mxu0 }
 0x495   :  { %v1700_v36 = vsel %vm1668_vm15, %v1476_v46, 0.0  ;;  %v1477_v28 = vmax.f32 %v1445_v35, 0.0  ;;  %v1329_v19 = vadd.f32 %v2118_v20, %v3293_v39  ;;  %v2121_v51 = vadd.f32 %v2120_v6, %v2119_v42  ;;  %v3884_v20 = vld [vmem:[#allocation9_spill] sm:$0xff] }
 0x496   :  { %v1731_v49 = vadd.f32 %v1730_v45, %v1700_v36  ;;  %v1620_v36 = vpop.permute.xlu0 %1619 }
 0x497   :  { %v1701_v58 = vsel %vm1669_vm0, %v1477_v28, 0.0  ;;  %v1407_v55 = vmul.f32 %v1329_v19, %v2773_v17  ;;  %v1332_v1 = vadd.f32 %v2121_v51, %v3299_v7  ;;  %vm1674_vm5 = vcmp.eq.s32.totalorder %v1620_v36, 1  ;;  %v3890_v36 = vld [vmem:[#allocation14_spill] sm:$0xff] }
 0x498   :  { %v1732_v21 = vadd.f32 %v1731_v49, %v1701_v58  ;;  %v1623_v58 = vpop.permute.xlu1 %1622 }
 0x499   :  { %v1446_v8 = vadd.f32 %v3524_v5, %v1407_v55  ;;  %v1408_v11 = vmul.f32 %v1332_v1, %v2777_v23  ;;  %v2122_v50 = vpop.f32.mrb[68].mxu0  ;;  %vm1675_vm6 = vcmp.eq.s32.totalorder %v1623_v58, 1 }
 0x49a   :  { %v2123_v4 = vpop.f32.mrb[69].mxu0 }
 0x49b   :  { %v1478_v14 = vmax.f32 %v1446_v8, 0.0  ;;  %v1447_v12 = vadd.f32 %v3524_v5, %v1408_v11  ;;  %v2124_v39 = vadd.f32 %v2123_v4, %v2122_v50  ;;  %v2125_v56 = vpop.f32.mrb[70].mxu0  ;;  %v3885_v50 = vld [vmem:[#allocation11_spill] sm:$0xff] }
 0x49c   :  { %v2126_v43 = vpop.f32.mrb[71].mxu0 }
 0x49d   :  { %v1702_v3 = vsel %vm1670_vm1, %v1478_v14, 0.0  ;;  %v1479_v17 = vmax.f32 %v1447_v12, 0.0  ;;  %v1337_v7 = vadd.f32 %v2124_v39, %v3305_v59  ;;  %v2127_v48 = vadd.f32 %v2126_v43, %v2125_v56  ;;  %v3886_v39 = vld [vmem:[#allocation10_spill] sm:$0xff] }
 0x49e   :  { %v1733_v44 = vadd.f32 %v1732_v21, %v1702_v3  ;;  %v1626_v3 = vpop.permute.xlu0 %1625  ;;  %vm1842_vm1 = vcmask 0  }
 0x49f   :  { %v1703_v61 = vsel %vm1671_vm2, %v1479_v17, 0.0  ;;  %v1409_v23 = vmul.f32 %v1337_v7, %v2781_v30  ;;  %v1340_v41 = vadd.f32 %v2127_v48, %v3296_v22  ;;  %vm1676_vm7 = vcmp.eq.s32.totalorder %v1626_v3, 1 }
 0x4a0   :  { %v1734_v40 = vadd.f32 %v1733_v44, %v1703_v61  ;;  %v1629_v61 = vpop.permute.xlu1 %1628 }
 0x4a1   :  { %v1448_v33 = vadd.f32 %v3524_v5, %v1409_v23  ;;  %v1410_v15 = vmul.f32 %v1340_v41, %v2779_v29  ;;  %v2128_v52 = vpop.f32.mrb[72].mxu0  ;;  %vm1677_vm8 = vcmp.eq.s32.totalorder %v1629_v61, 1 }
 0x4a2   :  { %v2129_v32 = vpop.f32.mrb[73].mxu0  ;;  %v1632_v53 = vpop.permute.xlu0 %1631 }
 0x4a3   :  { %v1480_v63 = vmax.f32 %v1448_v33, 0.0  ;;  %v1449_v47 = vadd.f32 %v3524_v5, %v1410_v15  ;;  %v2130_v59 = vadd.f32 %v2129_v32, %v2128_v52  ;;  %v2131_v16 = vpop.f32.mrb[74].mxu0  ;;  %vm1678_vm9 = vcmp.eq.s32.totalorder %v1632_v53, 1  ;;  %v3897_v53 = vld [vmem:[#allocation21_spill] sm:$0xff] }
 0x4a4   :  { %v2132_v24 = vpop.f32.mrb[75].mxu0 }
 0x4a5   :  { %v1704_v45 = vsel %vm1672_vm3, %v1480_v63, 0.0  ;;  %v1481_v30 = vmax.f32 %v1449_v47, 0.0  ;;  %v1345_v22 = vadd.f32 %v2130_v59, %v3325_v54  ;;  %v2133_v60 = vadd.f32 %v2132_v24, %v2131_v16  ;;  %v3887_v47 = vld [vmem:[#allocation12_spill] sm:$0xff] }
 0x4a6   :  { %v1735_v10 = vadd.f32 %v1734_v40, %v1704_v45 }
 0x4a7   :  { %v1705_v38 = vsel %vm1673_vm4, %v1481_v30, 0.0  ;;  %v1411_v29 = vmul.f32 %v1345_v22, %v2789_v37  ;;  %v1348_v57 = vadd.f32 %v2133_v60, %v3883_v26 }
 0x4a8   :  { %v1736_v46 = vadd.f32 %v1735_v10, %v1705_v38  ;;  %v1635_v10 = vpop.permute.xlu1 %1634 }
 0x4a9   :  { %v1450_v35 = vadd.f32 %v3524_v5, %v1411_v29  ;;  %v1412_v42 = vmul.f32 %v1348_v57, %v3884_v20  ;;  %v2134_v6 = vpop.f32.mrb[76].mxu0  ;;  %vm1679_vm10 = vcmp.eq.s32.totalorder %v1635_v10, 1  ;;  %v3889_v20 = vld [vmem:[#allocation13_spill] sm:$0xff] }
 0x4aa   :  { %v2135_v2 = vpop.f32.mrb[77].mxu0 }
 0x4ab   :  { %v1482_v28 = vmax.f32 %v1450_v35, 0.0  ;;  %v1451_v19 = vadd.f32 %v3524_v5, %v1412_v42  ;;  %v2136_v54 = vadd.f32 %v2135_v2, %v2134_v6  ;;  %v2137_v51 = vpop.f32.mrb[78].mxu0 }
 0x4ac   :  { %v2138_v49 = vpop.f32.mrb[79].mxu0 }
 0x4ad   :  { %v1706_v55 = vsel %vm1674_vm5, %v1482_v28, 0.0  ;;  %v1483_v37 = vmax.f32 %v1451_v19, 0.0  ;;  %v1353_v1 = vadd.f32 %v2136_v54, %v3337_v0  ;;  %v2139_v21 = vadd.f32 %v2138_v49, %v2137_v51  ;;  %v1638_v51 = vpop.permute.xlu0 %1637 }
 0x4ae   :  { %v1737_v8 = vadd.f32 %v1736_v46, %v1706_v55  ;;  %v3888_v46 = vld [vmem:[#allocation15_spill] sm:$0xff]  ;;  %vm1680_vm11 = vcmp.eq.s32.totalorder %v1638_v51, 1 }
 0x4af   :  { %v1707_v11 = vsel %vm1675_vm6, %v1483_v37, 0.0  ;;  %v1413_v4 = vmul.f32 %v1353_v1, %v3885_v50  ;;  %v1356_v13 = vadd.f32 %v2139_v21, %v3328_v18  ;;  %v1641_v1 = vpop.permute.xlu1 %1640 }
 0x4b0   :  { %v1738_v14 = vadd.f32 %v1737_v8, %v1707_v11  ;;  %v3891_v11 = vld [vmem:[#allocation20_spill] sm:$0xff]  ;;  %vm1681_vm12 = vcmp.eq.s32.totalorder %v1641_v1, 1 }
 0x4b1   :  { %v1452_v12 = vadd.f32 %v3524_v5, %v1413_v4  ;;  %v1414_v56 = vmul.f32 %v1356_v13, %v3886_v39  ;;  %v2140_v43 = vpop.f32.mrb[80].mxu0  ;;  %v1644_v3 = vpop.permute.xlu0 %1643 }
 0x4b2   :  { %v2141_v34 = vpop.f32.mrb[81].mxu0  ;;  %vm1682_vm13 = vcmp.eq.s32.totalorder %v1644_v3, 1 }
 0x4b3   :  { %v1484_v17 = vmax.f32 %v1452_v12, 0.0  ;;  %v1453_v7 = vadd.f32 %v3524_v5, %v1414_v56  ;;  %v2142_v0 = vadd.f32 %v2141_v34, %v2140_v43  ;;  %v2143_v48 = vpop.f32.mrb[82].mxu0  ;;  %v3892_v12 = vld [vmem:[#allocation17_spill] sm:$0xff]  ;;  %v3893_v56 = vld [vmem:[#allocation19_spill] sm:$0xff]  ;;  %v1647_v61 = vpop.permute.xlu1 %1646 }
 0x4b4   :  { %v2144_v44 = vpop.f32.mrb[83].mxu0  ;;  %vm1683_vm14 = vcmp.eq.s32.totalorder %v1647_v61, 1 }
 0x4b5   :  { %v1708_v23 = vsel %vm1676_vm7, %v1484_v17, 0.0  ;;  %v1485_v41 = vmax.f32 %v1453_v7, 0.0  ;;  %v1361_v18 = vadd.f32 %v2142_v0, %v3357_v9  ;;  %v2145_v40 = vadd.f32 %v2144_v44, %v2143_v48  ;;  %v3894_v7 = vld [vmem:[#allocation16_spill] sm:$0xff] }
 0x4b6   :  { %v1739_v33 = vadd.f32 %v1738_v14, %v1708_v23 }
 0x4b7   :  { %v1709_v15 = vsel %vm1677_vm8, %v1485_v41, 0.0  ;;  %v1415_v52 = vmul.f32 %v1361_v18, %v3811_v27  ;;  %v1364_v32 = vadd.f32 %v2145_v40, %v3363_v25 }
 0x4b8   :  { %v1740_v62 = vadd.f32 %v1739_v33, %v1709_v15 }
 0x4b9   :  { %v1454_v63 = vadd.f32 %v3524_v5, %v1415_v52  ;;  %v1416_v59 = vmul.f32 %v1364_v32, %v3887_v47  ;;  %v2146_v16 = vpop.f32.mrb[84].mxu0  ;;  %v3895_v32 = vld [vmem:[#allocation24_spill] sm:$0xff] }
 0x4ba   :  { %v2147_v24 = vpop.f32.mrb[85].mxu0 }
 0x4bb   :  { %v1486_v45 = vmax.f32 %v1454_v63, 0.0  ;;  %v1455_v30 = vadd.f32 %v3524_v5, %v1416_v59  ;;  %v2148_v9 = vadd.f32 %v2147_v24, %v2146_v16  ;;  %v2149_v22 = vpop.f32.mrb[86].mxu0  ;;  %v3896_v16 = vld [vmem:[#allocation23_spill] sm:$0xff] }
 0x4bc   :  { %v2150_v60 = vpop.f32.mrb[87].mxu0 }
 0x4bd   :  { %v1710_v38 = vsel %vm1678_vm9, %v1486_v45, 0.0  ;;  %v1487_v27 = vmax.f32 %v1455_v30, 0.0  ;;  %v1369_v25 = vadd.f32 %v2148_v9, %v3369_v31  ;;  %v2151_v29 = vadd.f32 %v2150_v60, %v2149_v22  ;;  %v1650_v9 = vpop.permute.xlu0 %1649  ;;  %v3898_v60 = vld [vmem:[#allocation22_spill] sm:$0xff] }
 0x4be   :  { %v1741_v26 = vadd.f32 %v1740_v62, %v1710_v38  ;;  %v1653_v38 = vpop.permute.xlu1 %1652  ;;  %vm1684_vm15 = vcmp.eq.s32.totalorder %v1650_v9, 1 }
 0x4bf   :  { %v1711_v57 = vsel %vm1679_vm10, %v1487_v27, 0.0  ;;  %v1417_v35 = vmul.f32 %v1369_v25, %v3888_v46  ;;  %v1372_v42 = vadd.f32 %v2151_v29, %v3889_v20  ;;  %vm1685_vm0 = vcmp.eq.s32.totalorder %v1653_v38, 1 }
 0x4c0   :  { %v1742_v6 = vadd.f32 %v1741_v26, %v1711_v57 }
 0x4c1   :  { %v1456_v2 = vadd.f32 %v3524_v5, %v1417_v35  ;;  %v1418_v28 = vmul.f32 %v1372_v42, %v3890_v36  ;;  %v2152_v19 = vpop.f32.mrb[88].mxu0 }
 0x4c2   :  { %v2153_v54 = vpop.f32.mrb[89].mxu0 }
 0x4c3   :  { %v1488_v49 = vmax.f32 %v1456_v2, 0.0  ;;  %v1457_v58 = vadd.f32 %v3524_v5, %v1418_v28  ;;  %v2154_v31 = vadd.f32 %v2153_v54, %v2152_v19  ;;  %v2155_v55 = vpop.f32.mrb[90].mxu0  ;;  %v1771_v19 = vld [vmem:[#allocation2] sm:$0x1] }
 0x4c4   :  { %v2156_v37 = vpop.f32.mrb[91].mxu0 }
 0x4c5   :  { %v1712_v21 = vsel %vm1680_vm11, %v1488_v49, 0.0  ;;  %v1489_v8 = vmax.f32 %v1457_v58, 0.0  ;;  %v1377_v50 = vadd.f32 %v2154_v31, %v3891_v11  ;;  %v2157_v4 = vadd.f32 %v2156_v37, %v2155_v55 }
 0x4c6   :  { %v1743_v13 = vadd.f32 %v1742_v6, %v1712_v21 }
 0x4c7   :  { %v1713_v14 = vsel %vm1681_vm12, %v1489_v8, 0.0  ;;  %v1419_v39 = vmul.f32 %v1377_v50, %v3892_v12  ;;  %v1380_v43 = vadd.f32 %v2157_v4, %v3893_v56 }
 0x4c8   :  { %v1744_v34 = vadd.f32 %v1743_v13, %v1713_v14 }
 0x4c9   :  { %v1458_v17 = vadd.f32 %v3524_v5, %v1419_v39  ;;  %v1420_v0 = vmul.f32 %v1380_v43, %v3894_v7  ;;  %v2158_v48 = vpop.f32.mrb[92].mxu0 }
 0x4ca   :  { %v2159_v44 = vpop.f32.mrb[93].mxu0 }
 0x4cb   :  { %v1490_v23 = vmax.f32 %v1458_v17, 0.0  ;;  %v1459_v41 = vadd.f32 %v3524_v5, %v1420_v0  ;;  %v2160_v18 = vadd.f32 %v2159_v44, %v2158_v48  ;;  %v2161_v40 = vpop.f32.mrb[94].mxu0 }
 0x4cc   :  { %v2162_v33 = vpop.f32.mrb[95].mxu0 }
 0x4cd   :  { %v1714_v15 = vsel %vm1682_vm13, %v1490_v23, 0.0  ;;  %v1491_v52 = vmax.f32 %v1459_v41, 0.0  ;;  %v1385_v62 = vadd.f32 %v2160_v18, %v3895_v32  ;;  %v2163_v63 = vadd.f32 %v2162_v33, %v2161_v40 }
 0x4ce   :  { %v1745_v47 = vadd.f32 %v1744_v34, %v1714_v15 }
 0x4cf   :  { %v1715_v59 = vsel %vm1683_vm14, %v1491_v52, 0.0  ;;  %v1421_v24 = vmul.f32 %v1385_v62, %v3896_v16  ;;  %v1388_v45 = vadd.f32 %v2163_v63, %v3897_v53 }
 0x4d0   :  { %v1746_v30 = vadd.f32 %v1745_v47, %v1715_v59 }
 0x4d1   :  { %v1460_v22 = vadd.f32 %v3524_v5, %v1421_v24  ;;  %v1422_v10 = vmul.f32 %v1388_v45, %v3898_v60 }
 0x4d3   :  { %v1492_v27 = vmax.f32 %v1460_v22, 0.0  ;;  %v1461_v25 = vadd.f32 %v3524_v5, %v1422_v10 }
 0x4d5   :  { %v1716_v29 = vsel %vm1684_vm15, %v1492_v27, 0.0  ;;  %v1493_v26 = vmax.f32 %v1461_v25, 0.0 }
 0x4d6   :  { %v1747_v57 = vadd.f32 %v1746_v30, %v1716_v29 }
 0x4d7   :  { %v1717_v46 = vsel %vm1685_vm0, %v1493_v26, 0.0 }
 0x4d8   :  { %v1748_v35 = vadd.f32 %v1747_v57, %v1717_v46 }
 0x4da   :  { %v1749_v20 = vrot.slane %v1748_v35, 4 }
 0x4dc   :  { %v1750_v42 = vadd.f32 %v1749_v20, %v1748_v35 }
 0x4de   :  { %v1751_v6 = vrot.slane %v1750_v42, 2 }
 0x4e0   :  { %v1752_v2 = vadd.f32 %v1751_v6, %v1750_v42 }
 0x4e2   :  { %v1753_v36 = vrot.slane %v1752_v2, 1 }
 0x4e4   :  { %v1754_v28 = vadd.f32 %v1753_v36, %v1752_v2 }
 0x4e6   :  { %2310 = vmatmul.mubr.f32.vlgmr.msra.gmra.mrb[96].mxu1 %v1754_v28 }
 0x5b9   :  { %v1838_v54 = vpop.f32.mrb[96].mxu1 }
 0x5ba   :  { %v1839_v5 = vadd.f32 %v1838_v54, %v1771_v19  ;;  %v2311_v51 = vpop.f32.mrb[97].mxu1 }
 0x5bc   :  { %1843 = vst.msk [vmem:[#allocation3] sm:$0x1] %vm1842_vm1, %v1839_v5 }
 0x5bd   :  { %2386 = shalt.err (!%p2383_p4)
}
 0x5be   :  { %s2387_s14 = scalar_lea.hbm %s3662_s9, 16 }
 0x5bf   :  { %p2388_p5 = scmp.ne.s32.totalorder %s3662_s9, %s2387_s14  ;;  %p2391_p6 = scmp.lt.u32.totalorder %s2387_s14, %s3662_s9 }
 0x5c1   :  { %p2393_p7 = pnand %p2391_p6, %p2388_p5 }
 0x5c3   :  { %2396 = shalt.err (!%p2393_p7)
}
 0x5c4   :  { %1853 = dma.vmem_to_hbm [thread:$0]  %s1851_s10, 16, %s3662_s9, [#allocation4]  }
 0x5c5   :  { %2397 = dma.done.wait [#allocation4], 16  }
 0x5c6   :  { %2398 = vsyncadd [#allocation4], 4294967280 }
 0x5c7   :  { %1857 = vsyncpa [#allocation4], 1 }

</bundles_post_ra>
